<compile_context>
chip_gen: v5e
topology: v5e:2x2
jax: 0.10.0
libtpu: 0.0.40
codegen_flags: <defaults>
</compile_context>

<pallas_src>
import math

import jax
import jax.numpy as jnp
import numpy as np
from jax.experimental import pallas as pl
from jax.experimental.pallas import tpu as pltpu


# ------------------------------ Pallas kernel ------------------------------
def _conv_ps_kernel(x_ref, w_ref, b_ref, o_ref):
    """Fused 3x3 conv + PixelShuffle on lane-packed rows: ONE MXU dot.

    x_ref: (NB, H+2, W*Cin)     H-zero-padded, channels-last lane-packed rows
    w_ref: (3*W*Cin, r*W*r*c2)  banded weight; vertical taps stacked on K,
                                sub-rows 'a' stacked (outermost) on N
    b_ref: (1, r*W*r*c2)        f32 per-output-column bias pattern
    o_ref: (NB, H, r*W*r*c2)    row-major identical to (NB, r*H, (r*W)*c2)
    """
    nb, hp2, wc = x_ref.shape
    h = hp2 - 2

    # im2col along H only: stack the 3 vertical taps on the contraction dim.
    # (f32 for the slice/concat relayouts, then cast to the matmul dtype.)
    x = x_ref[...].astype(jnp.float32)
    xcat = jnp.concatenate([x[:, kh:kh + h, :] for kh in range(3)], axis=-1)
    xcat = xcat.reshape(nb * h, 3 * wc).astype(w_ref.dtype)

    # Single MXU matmul: all taps, all channels, all r sub-rows at once.
    y = jnp.dot(xcat, w_ref[...], preferred_element_type=jnp.float32)
    y = y + b_ref[...]                       # bias broadcast over M (f32)

    o_ref[...] = y.reshape(nb, h, y.shape[-1]).astype(o_ref.dtype)


def _conv_ps_stage(xp, bigw, brow, out_dtype, nb):
    """One fused conv3x3 + PixelShuffle(r) stage on lane-packed rows."""
    n, hp2, wc = xp.shape
    h = hp2 - 2
    k3, rn = bigw.shape
    assert k3 == 3 * wc and n % nb == 0, (xp.shape, bigw.shape, nb)

    out_isz = jnp.dtype(out_dtype).itemsize
    # per-step VMEM: double-buffered blocks + in-kernel temporaries
    need = (2 * nb * hp2 * wc * xp.dtype.itemsize           # x blocks
            + 2 * nb * h * rn * out_isz                      # out blocks
            + 2 * k3 * rn * bigw.dtype.itemsize              # weight blocks
            + 2 * rn * 4                                     # bias blocks
            + nb * hp2 * wc * 4                              # f32 x copy
            + nb * h * (3 * wc * 6 + rn * 4))                # xcat (f32+bf16), y
    vmem_limit = int(min(max(4 * need, 32 * 2 ** 20), 64 * 2 ** 20))

    cost = pl.CostEstimate(
        flops=int(2 * n * h * k3 * rn),
        transcendentals=0,
        bytes_accessed=int(xp.size * xp.dtype.itemsize
                           + bigw.size * bigw.dtype.itemsize
                           + brow.size * 4
                           + n * h * rn * out_isz))

    return pl.pallas_call(
        _conv_ps_kernel,
        out_shape=jax.ShapeDtypeStruct((n, h, rn), out_dtype),
        grid=(n // nb,),
        in_specs=[
            pl.BlockSpec((nb, hp2, wc), lambda g: (g, 0, 0)),
            pl.BlockSpec((k3, rn), lambda g: (0, 0)),   # grid-invariant weight
            pl.BlockSpec((1, rn), lambda g: (0, 0)),    # grid-invariant bias
        ],
        out_specs=pl.BlockSpec((nb, h, rn), lambda g: (g, 0, 0)),
        compiler_params=pltpu.CompilerParams(
            dimension_semantics=("parallel",),
            vmem_limit_bytes=vmem_limit),
        cost_estimate=cost,
    )(xp, bigw, brow)


# --------------------------- weight / bias prep ----------------------------
def _build_banded_weight(w_oihw, bias, W, r, compute_dtype):
    """Bake horizontal taps, W zero-padding and the PixelShuffle channel
    permutation into one (3*W*Cin, r*W*r*c2) matrix (built in f32, cast last).

    K rows ordered (kh, w_in, ci); output columns ordered (a, w, b, c) so the
    kernel output reshapes for free into the pixel-shuffled lane-packed rows.
    """
    Cout, Cin, KH, KW = w_oihw.shape
    c2 = Cout // (r * r)
    G = r * c2                                       # lanes per output pixel
    # w_oihw[c*r*r + a*r + b, ci, kh, kw] -> wp[kh, kw, ci, a, b*c2 + c]
    wp = jnp.transpose(
        w_oihw.astype(jnp.float32).reshape(c2, r, r, Cin, KH, KW),
        (4, 5, 3, 1, 2, 0)).reshape(KH, KW, Cin, r, G)

    rows = []
    for kh in range(KH):
        cols = []
        for a in range(r):
            acc = jnp.zeros((W * Cin, W * G), jnp.float32)
            for kw in range(KW):
                # input column p feeds output column w iff p == w + kw - 1
                sel = np.zeros((W, W), np.float32)
                ww = np.arange(W)
                p = ww + kw - 1
                ok = (p >= 0) & (p < W)
                sel[p[ok], ww[ok]] = 1.0
                acc = acc + jnp.kron(jnp.asarray(sel), wp[kh, kw, :, a, :])
            cols.append(acc)
        rows.append(jnp.concatenate(cols, axis=1))   # (W*Cin, r*W*G)
    bigw = jnp.concatenate(rows, axis=0)             # (3*W*Cin, r*W*G)

    # bias pattern per output column (a, w, b, c) -> bias[c*r*r + a*r + b]
    bvec = jnp.transpose(bias.astype(jnp.float32).reshape(c2, r, r),
                         (1, 2, 0)).reshape(r, G)
    brow = jnp.broadcast_to(bvec[:, None, :], (r, W, G)).reshape(1, r * W * G)
    return bigw.astype(compute_dtype), brow


def _pick_batch_group(n, h):
    """How many images to fold into the matmul M dim per grid step (M ~ 256)."""
    if h % 8 != 0:                  # keep the in-kernel reshapes layout-free
        return 1
    cap = max(1, 256 // h)
    nb = 1
    for d in range(1, n + 1):
        if n % d == 0 and d <= cap:
            nb = d
    return nb


# --------------------------------- forward ---------------------------------
def upsampler_forward(x_nchw, w_oihw, bias, scale, compute_dtype=jnp.bfloat16):
    """Pallas implementation of Upsampler.forward (NCHW in / NCHW out)."""
    n, c1, h, w = x_nchw.shape
    out_dtype = x_nchw.dtype
    scale = int(scale)

    if (scale & (scale - 1)) == 0:
        r = 2
        n_steps = scale.bit_length() - 1
        c2 = w_oihw.shape[0] // 4
        if n_steps > 1 and c2 != c1:
            raise ValueError("chained x2 stages need c1 == c2 "
                             "(same constraint as the PyTorch module)")
    elif scale == 3:
        r = 3
        n_steps = 1
        c2 = w_oihw.shape[0] // 9
    else:
        raise NotImplementedError

    # single boundary relayout into the lane-packed channels-last row layout
    x = jnp.transpose(x_nchw, (0, 2, 3, 1)).reshape(n, h, w * c1)

    for step in range(n_steps):        # shared conv weights, as in PyTorch
        last = step == n_steps - 1
        bigw, brow = _build_banded_weight(w_oihw, bias, w, r, compute_dtype)
        nb = _pick_batch_group(n, h)
        xp = jnp.pad(x.astype(compute_dtype), ((0, 0), (1, 1), (0, 0)))
        y = _conv_ps_stage(xp, bigw, brow,
                           out_dtype=out_dtype if last else compute_dtype,
                           nb=nb)
        h, w = h * r, w * r
        # free (row-major) reshape: (n, H, r*W*G) -> (n, r*H, (r*W)*c2)
        x = y.reshape(n, h, w * c2)

    c_out = x.shape[2] // w
    return jnp.transpose(x.reshape(n, h, w, c_out),
                         (0, 3, 1, 2)).astype(out_dtype)


upsampler_forward_jit = jax.jit(upsampler_forward, static_argnums=(3, 4))


# ----------------------- pure-JAX reference for checking -------------------
def _ref_forward(x_nchw, w_oihw, b, scale):
    def conv(x):
        y = jax.lax.conv_general_dilated(
            x, w_oihw, window_strides=(1, 1), padding=((1, 1), (1, 1)),
            dimension_numbers=("NCHW", "OIHW", "NCHW"))
        return y + b.reshape(1, -1, 1, 1)

    def ps(x, r):
        N, C, H, W = x.shape
        Co = C // (r * r)
        x = x.reshape(N, Co, r, r, H, W)
        x = jnp.transpose(x, (0, 1, 4, 2, 5, 3))
        return x.reshape(N, Co, H * r, W * r)

    if (scale & (scale - 1)) == 0:
        for _ in range(int(scale).bit_length() - 1):
            x_nchw = ps(conv(x_nchw), 2)
    elif scale == 3:
        x_nchw = ps(conv(x_nchw), 3)
    else:
        raise NotImplementedError
    return x_nchw


if __name__ == "__main__":
    # Upsampler(c1=4, c2=4, scale=4): power-of-two branch, the shared conv is
    # applied twice (c1 == c2, matching the PyTorch module's weight reuse).
    c1, c2, scale = 4, 4, 4
    N, H, W = 2, 16, 16

    key = jax.random.PRNGKey(0)
    kx, kw, kb = jax.random.split(key, 3)
    x = jax.random.normal(kx, (N, c1, H, W), dtype=jnp.float32)

    # nn.Conv2d(c1, c2*4, 3, bias=True): weight (c2*4, c1, 3, 3), bias (c2*4,)
    fan_in = c1 * 3 * 3
    bound = 1.0 / math.sqrt(fan_in)
    w4 = jax.random.uniform(kw, (c2 * 4, c1, 3, 3), jnp.float32, -bound, bound)
    b4 = jax.random.uniform(kb, (c2 * 4,), jnp.float32, -bound, bound)
    ref = jax.block_until_ready(_ref_forward(x, w4, b4, scale))

    # f32 compute path (tolerance covers either MXU f32 precision mode)
    out_f32 = jax.block_until_ready(
        upsampler_forward_jit(x, w4, b4, scale, jnp.float32))
    assert out_f32.shape == (N, c2, H * scale, W * scale), out_f32.shape
    np.testing.assert_allclose(np.asarray(out_f32), np.asarray(ref),
                               rtol=1e-2, atol=1e-2)

    # default bf16 fast path (perf recommendation): looser tolerance
    out_bf16 = jax.block_until_ready(upsampler_forward_jit(x, w4, b4, scale))
    np.testing.assert_allclose(np.asarray(out_bf16), np.asarray(ref),
                               rtol=5e-2, atol=5e-2)

    # scale == 3 branch: nn.Conv2d(c1, c2*9, 3) + PixelShuffle(3)
    w9 = jax.random.uniform(kw, (c2 * 9, c1, 3, 3), jnp.float32, -bound, bound)
    b9 = jax.random.uniform(kb, (c2 * 9,), jnp.float32, -bound, bound)
    out3 = jax.block_until_ready(
        upsampler_forward_jit(x, w9, b9, 3, jnp.float32))
    ref3 = jax.block_until_ready(_ref_forward(x, w9, b9, 3))
    assert out3.shape == (N, c2, H * 3, W * 3), out3.shape
    np.testing.assert_allclose(np.asarray(out3), np.asarray(ref3),
                               rtol=1e-2, atol=1e-2)

    print("KERNEL_OK")
</pallas_src>

<mosaic_0001>
module attributes {stable_mosaic.version = 11 : i64} {
  func.func @_conv_ps_kernel(%arg0: i32, %arg1: memref<2x18x64xf32, #tpu.memory_space<vmem>>, %arg2: memref<192x256xf32, #tpu.memory_space<vmem>>, %arg3: memref<1x256xf32, #tpu.memory_space<vmem>>, %arg4: memref<2x16x256xf32, #tpu.memory_space<vmem>>) attributes {dimension_semantics = [#tpu.dimension_semantics<parallel>], iteration_bounds = array<i64: 1>, scalar_prefetch = 0 : i64, scratch_operands = 0 : i64, tpu.core_type = #tpu.core_type<tc>, window_params = [{transform_indices = @transform_0, window_bounds = array<i64: 2, 18, 64>}, {pipeline_mode = #tpu.pipeline_mode<synchronous>, transform_indices = @transform_1, window_bounds = array<i64: 192, 256>}, {pipeline_mode = #tpu.pipeline_mode<synchronous>, transform_indices = @transform_2, window_bounds = array<i64: 1, 256>}, {transform_indices = @transform_3, window_bounds = array<i64: 2, 16, 256>}]} {
    %c0 = arith.constant 0 : index
    %c0_0 = arith.constant 0 : index
    %c0_1 = arith.constant 0 : index
    %0 = vector.load %arg1[%c0, %c0_0, %c0_1] : memref<2x18x64xf32, #tpu.memory_space<vmem>>, vector<2x18x64xf32>
    %1 = vector.extract_strided_slice %0 {offsets = [0, 0, 0], sizes = [2, 16, 64], strides = [1, 1, 1]} : vector<2x18x64xf32> to vector<2x16x64xf32>
    %2 = vector.extract_strided_slice %0 {offsets = [0, 1, 0], sizes = [2, 16, 64], strides = [1, 1, 1]} : vector<2x18x64xf32> to vector<2x16x64xf32>
    %3 = vector.extract_strided_slice %0 {offsets = [0, 2, 0], sizes = [2, 16, 64], strides = [1, 1, 1]} : vector<2x18x64xf32> to vector<2x16x64xf32>
    %4 = tpu.concatenate %1, %2, %3 in 2 : vector<2x16x64xf32>, vector<2x16x64xf32>, vector<2x16x64xf32> -> vector<2x16x192xf32>
    %5 = vector.shape_cast %4 : vector<2x16x192xf32> to vector<32x192xf32>
    %c0_2 = arith.constant 0 : index
    %c0_3 = arith.constant 0 : index
    %6 = vector.load %arg2[%c0_2, %c0_3] : memref<192x256xf32, #tpu.memory_space<vmem>>, vector<192x256xf32>
    %cst = arith.constant dense<0.000000e+00> : vector<32x256xf32>
    %7 = tpu.matmul %5, %6, %cst {dimension_numbers = #tpu.dot_dimension_numbers<[1], [0], [0], [1], [0, 0, 1, 1], [], []>} : vector<32x192xf32>, vector<192x256xf32>, vector<32x256xf32> -> vector<32x256xf32>
    %c0_4 = arith.constant 0 : index
    %c0_5 = arith.constant 0 : index
    %8 = vector.load %arg3[%c0_4, %c0_5] : memref<1x256xf32, #tpu.memory_space<vmem>>, vector<1x256xf32>
    %9 = vector.broadcast %8 : vector<1x256xf32> to vector<32x256xf32>
    %10 = arith.addf %7, %9 : vector<32x256xf32>
    %11 = vector.shape_cast %10 : vector<32x256xf32> to vector<2x16x256xf32>
    %c0_6 = arith.constant 0 : index
    %c0_7 = arith.constant 0 : index
    %c0_8 = arith.constant 0 : index
    %12 = vector.load %arg4[%c0_6, %c0_7, %c0_8] : memref<2x16x256xf32, #tpu.memory_space<vmem>>, vector<2x16x256xf32>
    tpu.vector_store %arg4[%c0_6, %c0_7, %c0_8], %11 {strides = array<i32>} : memref<2x16x256xf32, #tpu.memory_space<vmem>>, vector<2x16x256xf32>,
    return
  }
  func.func @transform_0(%arg0: i32) -> (i32, i32, i32) {
    %c0_i32 = arith.constant 0 : i32
    %c0_i32_0 = arith.constant 0 : i32
    %c0_i32_1 = arith.constant 0 : i32
    return %arg0, %c0_i32, %c0_i32_0 : i32, i32, i32
  }
  func.func @transform_1(%arg0: i32) -> (i32, i32) {
    %c0_i32 = arith.constant 0 : i32
    %c0_i32_0 = arith.constant 0 : i32
    %c0_i32_1 = arith.constant 0 : i32
    return %c0_i32, %c0_i32_0 : i32, i32
  }
  func.func @transform_2(%arg0: i32) -> (i32, i32) {
    %c0_i32 = arith.constant 0 : i32
    %c0_i32_0 = arith.constant 0 : i32
    %c0_i32_1 = arith.constant 0 : i32
    return %c0_i32, %c0_i32_0 : i32, i32
  }
  func.func @transform_3(%arg0: i32) -> (i32, i32, i32) {
    %c0_i32 = arith.constant 0 : i32
    %c0_i32_0 = arith.constant 0 : i32
    %c0_i32_1 = arith.constant 0 : i32
    return %arg0, %c0_i32, %c0_i32_0 : i32, i32, i32
  }
}

module attributes {stable_mosaic.version = 11 : i64} {
  func.func @_conv_ps_kernel(%arg0: i32, %arg1: memref<2x34x128xf32, #tpu.memory_space<vmem>>, %arg2: memref<384x512xf32, #tpu.memory_space<vmem>>, %arg3: memref<1x512xf32, #tpu.memory_space<vmem>>, %arg4: memref<2x32x512xf32, #tpu.memory_space<vmem>>) attributes {dimension_semantics = [#tpu.dimension_semantics<parallel>], iteration_bounds = array<i64: 1>, scalar_prefetch = 0 : i64, scratch_operands = 0 : i64, tpu.core_type = #tpu.core_type<tc>, window_params = [{transform_indices = @transform_0, window_bounds = array<i64: 2, 34, 128>}, {pipeline_mode = #tpu.pipeline_mode<synchronous>, transform_indices = @transform_1, window_bounds = array<i64: 384, 512>}, {pipeline_mode = #tpu.pipeline_mode<synchronous>, transform_indices = @transform_2, window_bounds = array<i64: 1, 512>}, {transform_indices = @transform_3, window_bounds = array<i64: 2, 32, 512>}]} {
    %c0 = arith.constant 0 : index
    %c0_0 = arith.constant 0 : index
    %c0_1 = arith.constant 0 : index
    %0 = vector.load %arg1[%c0, %c0_0, %c0_1] : memref<2x34x128xf32, #tpu.memory_space<vmem>>, vector<2x34x128xf32>
    %1 = vector.extract_strided_slice %0 {offsets = [0, 0, 0], sizes = [2, 32, 128], strides = [1, 1, 1]} : vector<2x34x128xf32> to vector<2x32x128xf32>
    %2 = vector.extract_strided_slice %0 {offsets = [0, 1, 0], sizes = [2, 32, 128], strides = [1, 1, 1]} : vector<2x34x128xf32> to vector<2x32x128xf32>
    %3 = vector.extract_strided_slice %0 {offsets = [0, 2, 0], sizes = [2, 32, 128], strides = [1, 1, 1]} : vector<2x34x128xf32> to vector<2x32x128xf32>
    %4 = tpu.concatenate %1, %2, %3 in 2 : vector<2x32x128xf32>, vector<2x32x128xf32>, vector<2x32x128xf32> -> vector<2x32x384xf32>
    %5 = vector.shape_cast %4 : vector<2x32x384xf32> to vector<64x384xf32>
    %c0_2 = arith.constant 0 : index
    %c0_3 = arith.constant 0 : index
    %6 = vector.load %arg2[%c0_2, %c0_3] : memref<384x512xf32, #tpu.memory_space<vmem>>, vector<384x512xf32>
    %cst = arith.constant dense<0.000000e+00> : vector<64x512xf32>
    %7 = tpu.matmul %5, %6, %cst {dimension_numbers = #tpu.dot_dimension_numbers<[1], [0], [0], [1], [0, 0, 1, 1], [], []>} : vector<64x384xf32>, vector<384x512xf32>, vector<64x512xf32> -> vector<64x512xf32>
    %c0_4 = arith.constant 0 : index
    %c0_5 = arith.constant 0 : index
    %8 = vector.load %arg3[%c0_4, %c0_5] : memref<1x512xf32, #tpu.memory_space<vmem>>, vector<1x512xf32>
    %9 = vector.broadcast %8 : vector<1x512xf32> to vector<64x512xf32>
    %10 = arith.addf %7, %9 : vector<64x512xf32>
    %11 = vector.shape_cast %10 : vector<64x512xf32> to vector<2x32x512xf32>
    %c0_6 = arith.constant 0 : index
    %c0_7 = arith.constant 0 : index
    %c0_8 = arith.constant 0 : index
    %12 = vector.load %arg4[%c0_6, %c0_7, %c0_8] : memref<2x32x512xf32, #tpu.memory_space<vmem>>, vector<2x32x512xf32>
    tpu.vector_store %arg4[%c0_6, %c0_7, %c0_8], %11 {strides = array<i32>} : memref<2x32x512xf32, #tpu.memory_space<vmem>>, vector<2x32x512xf32>,
    return
  }
  func.func @transform_0(%arg0: i32) -> (i32, i32, i32) {
    %c0_i32 = arith.constant 0 : i32
    %c0_i32_0 = arith.constant 0 : i32
    %c0_i32_1 = arith.constant 0 : i32
    return %arg0, %c0_i32, %c0_i32_0 : i32, i32, i32
  }
  func.func @transform_1(%arg0: i32) -> (i32, i32) {
    %c0_i32 = arith.constant 0 : i32
    %c0_i32_0 = arith.constant 0 : i32
    %c0_i32_1 = arith.constant 0 : i32
    return %c0_i32, %c0_i32_0 : i32, i32
  }
  func.func @transform_2(%arg0: i32) -> (i32, i32) {
    %c0_i32 = arith.constant 0 : i32
    %c0_i32_0 = arith.constant 0 : i32
    %c0_i32_1 = arith.constant 0 : i32
    return %c0_i32, %c0_i32_0 : i32, i32
  }
  func.func @transform_3(%arg0: i32) -> (i32, i32, i32) {
    %c0_i32 = arith.constant 0 : i32
    %c0_i32_0 = arith.constant 0 : i32
    %c0_i32_1 = arith.constant 0 : i32
    return %arg0, %c0_i32, %c0_i32_0 : i32, i32, i32
  }
}

</mosaic_0001>

<bundles_post_ra>
// kernel: upsampler_forward.2
= control target key start
LH: loop header
LB: loop body
LE: loop exit
PB: predicated region body
PF: predicated region fallthrough
CT: control target
= control target key end

     0   :  { %vm26_vm0 = vcmask 1046528   ;;  %s264_s7 = smov 64   ;;  %vm49_vm1 = vcmask 1045504   ;;  %vm60_vm2 = vcmask 523264   ;;  %s526_s0 = inlined_call_operand.vmem [shape: f32[2,18,64], index: 0, kind: input, shape index: {}]   ;;  %s527_s1 = inlined_call_operand.vmem [shape: f32[192,256], index: 1, kind: input, shape index: {}]   ;;  %s528_s2 = inlined_call_operand.vmem [shape: f32[1,256], index: 2, kind: input, shape index: {}]   ;;  %s529_s3 = inlined_call_operand.vmem [shape: f32[2,16,256], index: 3, kind: output, shape index: {}]  }
   0x1   :  { %v288_v0 = vld [vmem:[%s526_s0] sm:$0xff]  ;;  %v293_v1 = vld [vmem:[%s526_s0 + $0x8] sm:$0xff]  ;;  %v300_v4 = vld [vmem:[%s526_s0 + $0x18] sm:$0xff] }
   0x2   :  { %v27_v2 = vrot.slane %v288_v0, 1  ;;  %v28_v3 = vrot.slane %v293_v1, 1  ;;  %v305_v5 = vld [vmem:[%s526_s0 + $0x20] sm:$0xff]  ;;  %v95_v6 = vld [vmem:[%s527_s1 + $0xf0] sm:$0xff]  ;;  %v32_v8 = vrot.slane %v300_v4, 1  ;;  %v96_v10 = vld [vmem:[%s527_s1 + $0xf8] sm:$0xff] }
   0x3   :  { %v313_v7 = vld [vmem:[%s526_s0 + $0x10] sm:$0x3]  ;;  %v33_v9 = vrot.slane %v305_v5, 1  ;;  %127 = vmatpush.msra.mxu0 %v95_v6  ;;  %v93_v11 = vld [vmem:[%s527_s1 + $0xe0] sm:$0xff]  ;;  %v327_v13 = vld [vmem:[%s526_s0 + $0x28] sm:$0x3]  ;;  %185 = vmatpush.msra.mxu2 %v96_v10 }
   0x4   :  { %v29_v12 = vsel %vm26_vm0, %v27_v2, %v28_v3  ;;  %v94_v14 = vld [vmem:[%s527_s1 + $0xe8] sm:$0xff]  ;;  %v91_v15 = vld [vmem:[%s527_s1 + $0xd0] sm:$0xff]  ;;  %v92_v17 = vld [vmem:[%s527_s1 + $0xd8] sm:$0xff]  ;;  %v30_v18 = vrot.slane %v313_v7, 1  ;;  %v35_v20 = vrot.slane %v327_v13, 1  ;;  %v50_v62 = vrot.slane %v288_v0, 2 }
   0x5   :  { %37 = vrot.lane.b32.xlu0 %v29_v12, %s264_s7  ;;  %v34_v16 = vsel %vm26_vm0, %v32_v8, %v33_v9  ;;  %128 = vmatpush.msra.mxu0 %v93_v11  ;;  %v89_v19 = vld [vmem:[%s527_s1 + $0xc0] sm:$0xff]  ;;  %v90_v21 = vld [vmem:[%s527_s1 + $0xc8] sm:$0xff]  ;;  %v87_v22 = vld [vmem:[%s527_s1 + $0xb0] sm:$0xff]  ;;  %v51_v63 = vrot.slane %v293_v1, 2  ;;  %v53_v8 = vrot.slane %v313_v7, 2  ;;  %v55_v10 = vrot.slane %v300_v4, 2 }
   0x6   :  { %41 = vrot.lane.b32.xlu1 %v34_v16, %s264_s7  ;;  %186 = vmatpush.msra.mxu2 %v94_v14  ;;  %v88_v23 = vld [vmem:[%s527_s1 + $0xb8] sm:$0xff]  ;;  %v111_v24 = vld [vmem:[%s527_s1 + $0x170] sm:$0xff]  ;;  %v31_v25 = vsel %vm26_vm0, %v28_v3, %v30_v18  ;;  %v85_v26 = vld [vmem:[%s527_s1 + $0xa0] sm:$0xff]  ;;  %v36_v29 = vsel %vm26_vm0, %v33_v9, %v35_v20  ;;  %v56_v11 = vrot.slane %v305_v5, 2  ;;  %v58_v14 = vrot.slane %v327_v13, 2 }
   0x7   :  { %129 = vmatpush.msra.mxu0 %v91_v15  ;;  %164 = vmatpush.msra.mxu1 %v111_v24  ;;  %v112_v27 = vld [vmem:[%s527_s1 + $0x178] sm:$0xff]  ;;  %v109_v28 = vld [vmem:[%s527_s1 + $0x160] sm:$0xff]  ;;  %v86_v30 = vld [vmem:[%s527_s1 + $0xa8] sm:$0xff]  ;;  %v52_v6 = vsel %vm49_vm1, %v50_v62, %v51_v63  ;;  %v54_v9 = vsel %vm49_vm1, %v51_v63, %v53_v8 }
   0x8   :  { %187 = vmatpush.msra.mxu2 %v92_v17  ;;  %222 = vmatpush.msra.mxu3 %v112_v27  ;;  %v83_v31 = vld [vmem:[%s527_s1 + $0x90] sm:$0xff]  ;;  %v110_v32 = vld [vmem:[%s527_s1 + $0x168] sm:$0xff]  ;;  %v84_v33 = vld [vmem:[%s527_s1 + $0x98] sm:$0xff]  ;;  %v57_v12 = vsel %vm49_vm1, %v55_v10, %v56_v11  ;;  %v59_v7 = vsel %vm49_vm1, %v56_v11, %v58_v14 }
   0x9   :  { %130 = vmatpush.msra.mxu0 %v89_v19  ;;  %165 = vmatpush.msra.mxu1 %v109_v28  ;;  %v107_v34 = vld [vmem:[%s527_s1 + $0x150] sm:$0xff]  ;;  %v81_v35 = vld [vmem:[%s527_s1 + $0x80] sm:$0xff]  ;;  %v108_v36 = vld [vmem:[%s527_s1 + $0x158] sm:$0xff] }
   0xa   :  { %188 = vmatpush.msra.mxu2 %v90_v21  ;;  %v82_v37 = vld [vmem:[%s527_s1 + $0x88] sm:$0xff]  ;;  %223 = vmatpush.msra.mxu3 %v110_v32  ;;  %v105_v38 = vld [vmem:[%s527_s1 + $0x140] sm:$0xff]  ;;  %v79_v39 = vld [vmem:[%s527_s1 + $0x70] sm:$0xff] }
   0xb   :  { %131 = vmatpush.msra.mxu0 %v87_v22  ;;  %166 = vmatpush.msra.mxu1 %v107_v34  ;;  %v106_v40 = vld [vmem:[%s527_s1 + $0x148] sm:$0xff]  ;;  %v80_v41 = vld [vmem:[%s527_s1 + $0x78] sm:$0xff]  ;;  %v103_v42 = vld [vmem:[%s527_s1 + $0x130] sm:$0xff] }
   0xc   :  { %189 = vmatpush.msra.mxu2 %v88_v23  ;;  %224 = vmatpush.msra.mxu3 %v108_v36  ;;  %v77_v43 = vld [vmem:[%s527_s1 + $0x60] sm:$0xff]  ;;  %v104_v44 = vld [vmem:[%s527_s1 + $0x138] sm:$0xff]  ;;  %v78_v45 = vld [vmem:[%s527_s1 + $0x68] sm:$0xff] }
   0xd   :  { %39 = vrot.lane.b32.xlu0 %v31_v25, %s264_s7  ;;  %132 = vmatpush.msra.mxu0 %v85_v26  ;;  %v101_v46 = vld [vmem:[%s527_s1 + $0x120] sm:$0xff]  ;;  %v75_v47 = vld [vmem:[%s527_s1 + $0x50] sm:$0xff]  ;;  %v102_v48 = vld [vmem:[%s527_s1 + $0x128] sm:$0xff] }
   0xe   :  { %43 = vrot.lane.b32.xlu1 %v36_v29, %s264_s7  ;;  %190 = vmatpush.msra.mxu2 %v86_v30  ;;  %v76_v49 = vld [vmem:[%s527_s1 + $0x58] sm:$0xff]  ;;  %v73_v50 = vld [vmem:[%s527_s1 + $0x40] sm:$0xff]  ;;  %v74_v51 = vld [vmem:[%s527_s1 + $0x48] sm:$0xff] }
   0xf   :  { %133 = vmatpush.msra.mxu0 %v83_v31  ;;  %167 = vmatpush.msra.mxu1 %v105_v38  ;;  %v71_v52 = vld [vmem:[%s527_s1 + $0x30] sm:$0xff]  ;;  %v72_v53 = vld [vmem:[%s527_s1 + $0x38] sm:$0xff]  ;;  %v69_v54 = vld [vmem:[%s527_s1 + $0x20] sm:$0xff] }
  0x10   :  { %191 = vmatpush.msra.mxu2 %v84_v33  ;;  %225 = vmatpush.msra.mxu3 %v106_v40  ;;  %v70_v55 = vld [vmem:[%s527_s1 + $0x28] sm:$0xff]  ;;  %v67_v56 = vld [vmem:[%s527_s1 + $0x10] sm:$0xff]  ;;  %v68_v57 = vld [vmem:[%s527_s1 + $0x18] sm:$0xff] }
  0x11   :  { %134 = vmatpush.msra.mxu0 %v81_v35  ;;  %168 = vmatpush.msra.mxu1 %v103_v42  ;;  %v65_v58 = vld [vmem:[%s527_s1] sm:$0xff]  ;;  %v99_v59 = vld [vmem:[%s527_s1 + $0x110] sm:$0xff]  ;;  %v66_v60 = vld [vmem:[%s527_s1 + $0x8] sm:$0xff] }
  0x12   :  { %192 = vmatpush.msra.mxu2 %v82_v37  ;;  %226 = vmatpush.msra.mxu3 %v104_v44  ;;  %v100_v61 = vld [vmem:[%s527_s1 + $0x118] sm:$0xff]  ;;  %v97_v2 = vld [vmem:[%s527_s1 + $0x100] sm:$0xff]  ;;  %v98_v3 = vld [vmem:[%s527_s1 + $0x108] sm:$0xff] }
  0x13   :  { %135 = vmatpush.msra.mxu0 %v79_v39  ;;  %169 = vmatpush.msra.mxu1 %v101_v46 }
  0x14   :  { %193 = vmatpush.msra.mxu2 %v80_v41  ;;  %227 = vmatpush.msra.mxu3 %v102_v48 }
  0x15   :  { %136 = vmatpush.msra.mxu0 %v77_v43  ;;  %170 = vmatpush.msra.mxu1 %v99_v59 }
  0x16   :  { %194 = vmatpush.msra.mxu2 %v78_v45  ;;  %228 = vmatpush.msra.mxu3 %v100_v61 }
  0x17   :  { %137 = vmatpush.msra.mxu0 %v75_v47  ;;  %171 = vmatpush.msra.mxu1 %v97_v2 }
  0x18   :  { %195 = vmatpush.msra.mxu2 %v76_v49  ;;  %229 = vmatpush.msra.mxu3 %v98_v3 }
  0x19   :  { %138 = vmatpush.msra.mxu0 %v73_v50  ;;  %255 = vmatmul.msk.f32.vlgmr.msra.gmra.mxu1 %vm60_vm2, %v52_v6 }
  0x1a   :  { %196 = vmatpush.msra.mxu2 %v74_v51  ;;  %259 = vmatmul.msk.f32.vlgmr.msra.gmra.mxu3 %vm60_vm2, %v52_v6 }
  0x1b   :  { %139 = vmatpush.msra.mxu0 %v71_v52 }
  0x1c   :  { %197 = vmatpush.msra.mxu2 %v72_v53 }
  0x1d   :  { %140 = vmatpush.msra.mxu0 %v69_v54 }
  0x1e   :  { %198 = vmatpush.msra.mxu2 %v70_v55 }
  0x1f   :  { %141 = vmatpush.msra.mxu0 %v67_v56 }
  0x20   :  { %199 = vmatpush.msra.mxu2 %v68_v57 }
  0x21   :  { %142 = vmatpush.msra.mxu0 %v65_v58  ;;  %256 = vmatmul.msk.f32.gmra.mxu1 %vm60_vm2, %v54_v9 }
  0x22   :  { %200 = vmatpush.msra.mxu2 %v66_v60  ;;  %260 = vmatmul.msk.f32.gmra.mxu3 %vm60_vm2, %v54_v9 }
  0x29   :  { %257 = vmatmul.msk.f32.gmra.mxu1 %vm60_vm2, %v57_v12 }
  0x2a   :  { %261 = vmatmul.msk.f32.gmra.mxu3 %vm60_vm2, %v57_v12 }
  0x31   :  { %258 = vmatmul.msk.f32.gmra.mxu1 %vm60_vm2, %v59_v7 }
  0x32   :  { %262 = vmatmul.msk.f32.gmra.mxu3 %vm60_vm2, %v59_v7 }
  0x77   :  { %v38_v15 = vpop.permute.xlu0 %37 }
  0x78   :  { %v61_v16 = vsel %vm60_vm2, %v288_v0, %v38_v15  ;;  %v42_v19 = vpop.permute.xlu1 %41  ;;  %v113_v0 = vld [vmem:[%s528_s2] sm:$0x3] }
  0x79   :  { %143 = vmatmul.f32.vlgmr.msra.gmra.mxu0 %v61_v16  ;;  %201 = vmatmul.f32.vlgmr.msra.gmra.mxu2 %v61_v16  ;;  %v63_v13 = vsel %vm60_vm2, %v300_v4, %v42_v19  ;;  %v116_v27 = vperm.slane %v113_v0, 1 }
  0x7f   :  { %v40_v17 = vpop.permute.xlu0 %39 }
  0x80   :  { %v62_v18 = vsel %vm60_vm2, %v293_v1, %v40_v17  ;;  %v44_v20 = vpop.permute.xlu1 %43  ;;  %v115_v1 = vperm.slane %v113_v0, 0 }
  0x81   :  { %146 = vmatmul.f32.gmra.mxu0 %v62_v18  ;;  %204 = vmatmul.f32.gmra.mxu2 %v62_v18  ;;  %v64_v21 = vsel %vm60_vm2, %v305_v5, %v44_v20 }
  0x89   :  { %149 = vmatmul.f32.gmra.mxu0 %v63_v13  ;;  %207 = vmatmul.f32.gmra.mxu2 %v63_v13 }
  0x91   :  { %152 = vmatmul.f32.gmra.mxu0 %v64_v21  ;;  %210 = vmatmul.f32.gmra.mxu2 %v64_v21 }
  0x96   :  { %v173_v22 = vpop.f32.mrf.mxu1 }
  0x9d   :  { %v231_v24 = vpop.f32.mrf.mxu3 }
  0x9e   :  { %v176_v4 = vpop.f32.mrf.mxu1 }
  0xa5   :  { %v234_v32 = vpop.f32.mrf.mxu3 }
  0xa6   :  { %v179_v35 = vpop.f32.mrf.mxu1 }
  0xad   :  { %v237_v41 = vpop.f32.mrf.mxu3 }
  0xae   :  { %v182_v45 = vpop.f32.mrf.mxu1 }
  0xb5   :  { %v240_v50 = vpop.f32.mrf.mxu3 }
  0xf6   :  { %v144_v23 = vpop.f32.mrf.mxu0 }
  0xf7   :  { %v145_v25 = vadd.f32 %v144_v23, %v115_v1 }
  0xf9   :  { %v174_v26 = vadd.f32 %v173_v22, %v145_v25 }
  0xfb   :  { %243 = vst [vmem:[%s529_s3] sm:$0xff] %v174_v26 }
  0xfc   :  { %v202_v28 = vpop.f32.mrf.mxu2 }
  0xfd   :  { %v203_v5 = vadd.f32 %v202_v28, %v116_v27 }
  0xfe   :  { %v147_v29 = vpop.f32.mrf.mxu0 }
  0xff   :  { %v148_v30 = vadd.f32 %v147_v29, %v115_v1  ;;  %v232_v31 = vadd.f32 %v231_v24, %v203_v5 }
 0x101   :  { %244 = vst [vmem:[%s529_s3 + $0x8] sm:$0xff] %v232_v31  ;;  %v177_v33 = vadd.f32 %v176_v4, %v148_v30 }
 0x103   :  { %245 = vst [vmem:[%s529_s3 + $0x10] sm:$0xff] %v177_v33 }
 0x104   :  { %v205_v34 = vpop.f32.mrf.mxu2 }
 0x105   :  { %v206_v36 = vadd.f32 %v205_v34, %v116_v27 }
 0x106   :  { %v150_v37 = vpop.f32.mrf.mxu0 }
 0x107   :  { %v151_v38 = vadd.f32 %v150_v37, %v115_v1  ;;  %v235_v39 = vadd.f32 %v234_v32, %v206_v36 }
 0x109   :  { %246 = vst [vmem:[%s529_s3 + $0x18] sm:$0xff] %v235_v39  ;;  %v180_v40 = vadd.f32 %v179_v35, %v151_v38 }
 0x10b   :  { %247 = vst [vmem:[%s529_s3 + $0x20] sm:$0xff] %v180_v40 }
 0x10c   :  { %v208_v42 = vpop.f32.mrf.mxu2 }
 0x10d   :  { %v209_v43 = vadd.f32 %v208_v42, %v116_v27 }
 0x10e   :  { %v153_v44 = vpop.f32.mrf.mxu0 }
 0x10f   :  { %v154_v46 = vadd.f32 %v153_v44, %v115_v1  ;;  %v238_v47 = vadd.f32 %v237_v41, %v209_v43 }
 0x111   :  { %248 = vst [vmem:[%s529_s3 + $0x28] sm:$0xff] %v238_v47  ;;  %v183_v48 = vadd.f32 %v182_v45, %v154_v46 }
 0x113   :  { %249 = vst [vmem:[%s529_s3 + $0x30] sm:$0xff] %v183_v48 }
 0x114   :  { %v211_v49 = vpop.f32.mrf.mxu2 }
 0x115   :  { %v212_v51 = vadd.f32 %v211_v49, %v116_v27 }
 0x117   :  { %v241_v52 = vadd.f32 %v240_v50, %v212_v51 }
 0x119   :  { %250 = vst [vmem:[%s529_s3 + $0x38] sm:$0xff] %v241_v52 }

// kernel: upsampler_forward.3
= control target key start
LH: loop header
LB: loop body
LE: loop exit
PB: predicated region body
PF: predicated region fallthrough
CT: control target
= control target key end

     0   :  { %vm61_vm0 = vcmask 1045504   ;;  %vm34_vm1 = vcmask 1046528   ;;  %s1813_s1 = inlined_call_operand.vmem [shape: f32[384,512], index: 1, kind: input, shape index: {}]   ;;  %s1814_s0 = inlined_call_operand.vmem [shape: f32[2,34,128], index: 0, kind: input, shape index: {}]   ;;  %s1815_s2 = inlined_call_operand.vmem [shape: f32[1,512], index: 2, kind: input, shape index: {}]   ;;  %s1816_s3 = inlined_call_operand.vmem [shape: f32[2,32,512], index: 3, kind: output, shape index: {}]  }
   0x1   :  { %v148_v0 = vld [vmem:[%s1813_s1 + $0x1e0] sm:$0xff]  ;;  %v149_v5 = vld [vmem:[%s1813_s1 + $0x1e8] sm:$0xff] }
   0x2   :  { %v276_v1 = vld [vmem:[%s1813_s1 + $0x5e0] sm:$0xff]  ;;  %290 = vmatpush.msra.mxu0 %v148_v0  ;;  %413 = vmatpush.msra.mxu3 %v149_v5  ;;  %v145_v9 = vld [vmem:[%s1813_s1 + $0x1c8] sm:$0xff]  ;;  %v150_v5 = vld [vmem:[%s1813_s1 + $0x1f0] sm:$0xff] }
   0x3   :  { %v144_v2 = vld [vmem:[%s1813_s1 + $0x1c0] sm:$0xff]  ;;  %372 = vmatpush.msra.mxu2 %v276_v1  ;;  %v141_v13 = vld [vmem:[%s1813_s1 + $0x1a8] sm:$0xff] }
   0x4   :  { %v212_v3 = vld [vmem:[%s1813_s1 + $0x3e0] sm:$0xff]  ;;  %291 = vmatpush.msra.mxu0 %v144_v2  ;;  %414 = vmatpush.msra.mxu3 %v145_v9  ;;  %v137_v15 = vld [vmem:[%s1813_s1 + $0x188] sm:$0xff] }
   0x5   :  { %v272_v4 = vld [vmem:[%s1813_s1 + $0x5c0] sm:$0xff]  ;;  %331 = vmatpush.msra.mxu1 %v212_v3  ;;  %v133_v19 = vld [vmem:[%s1813_s1 + $0x168] sm:$0xff] }
   0x6   :  { %v140_v6 = vld [vmem:[%s1813_s1 + $0x1a0] sm:$0xff]  ;;  %373 = vmatpush.msra.mxu2 %v272_v4  ;;  %415 = vmatpush.msra.mxu3 %v141_v13  ;;  %v129_v23 = vld [vmem:[%s1813_s1 + $0x148] sm:$0xff] }
   0x7   :  { %v208_v7 = vld [vmem:[%s1813_s1 + $0x3c0] sm:$0xff]  ;;  %292 = vmatpush.msra.mxu0 %v140_v6  ;;  %v125_v27 = vld [vmem:[%s1813_s1 + $0x128] sm:$0xff] }
   0x8   :  { %v268_v8 = vld [vmem:[%s1813_s1 + $0x5a0] sm:$0xff]  ;;  %332 = vmatpush.msra.mxu1 %v208_v7  ;;  %416 = vmatpush.msra.mxu3 %v137_v15  ;;  %v121_v31 = vld [vmem:[%s1813_s1 + $0x108] sm:$0xff]  ;;  %v1050_v7 = vld [vmem:[%s1814_s0 + $0x10] sm:$0xff] }
   0x9   :  { %v204_v10 = vld [vmem:[%s1813_s1 + $0x3a0] sm:$0xff]  ;;  %374 = vmatpush.msra.mxu2 %v268_v8  ;;  %v117_v35 = vld [vmem:[%s1813_s1 + $0xe8] sm:$0xff]  ;;  %v65_v13 = vrot.slane %v1050_v7, 2 }
   0xa   :  { %v136_v11 = vld [vmem:[%s1813_s1 + $0x180] sm:$0xff]  ;;  %333 = vmatpush.msra.mxu1 %v204_v10  ;;  %417 = vmatpush.msra.mxu3 %v133_v19  ;;  %v113_v39 = vld [vmem:[%s1813_s1 + $0xc8] sm:$0xff] }
   0xb   :  { %v264_v12 = vld [vmem:[%s1813_s1 + $0x580] sm:$0xff]  ;;  %293 = vmatpush.msra.mxu0 %v136_v11  ;;  %v109_v43 = vld [vmem:[%s1813_s1 + $0xa8] sm:$0xff]  ;;  %v214_v11 = vld [vmem:[%s1813_s1 + $0x3f0] sm:$0xff] }
   0xc   :  { %v200_v14 = vld [vmem:[%s1813_s1 + $0x380] sm:$0xff]  ;;  %375 = vmatpush.msra.mxu2 %v264_v12  ;;  %418 = vmatpush.msra.mxu3 %v129_v23  ;;  %v105_v48 = vld [vmem:[%s1813_s1 + $0x88] sm:$0xff]  ;;  %v146_v12 = vld [vmem:[%s1813_s1 + $0x1d0] sm:$0xff] }
   0xd   :  { %v132_v16 = vld [vmem:[%s1813_s1 + $0x160] sm:$0xff]  ;;  %334 = vmatpush.msra.mxu1 %v200_v14  ;;  %v996_v51 = vld [vmem:[%s1814_s0 + $0x8] sm:$0xff]  ;;  %v138_v23 = vld [vmem:[%s1813_s1 + $0x190] sm:$0xff] }
   0xe   :  { %v260_v17 = vld [vmem:[%s1813_s1 + $0x560] sm:$0xff]  ;;  %294 = vmatpush.msra.mxu0 %v132_v16  ;;  %419 = vmatpush.msra.mxu3 %v125_v27  ;;  %v101_v53 = vld [vmem:[%s1813_s1 + $0x68] sm:$0xff]  ;;  %v63_v59 = vrot.slane %v996_v51, 2  ;;  %v36_v1 = vrot.slane %v996_v51, 1  ;;  %v210_v16 = vld [vmem:[%s1813_s1 + $0x3d0] sm:$0xff] }
   0xf   :  { %v196_v18 = vld [vmem:[%s1813_s1 + $0x360] sm:$0xff]  ;;  %376 = vmatpush.msra.mxu2 %v260_v17  ;;  %v97_v57 = vld [vmem:[%s1813_s1 + $0x48] sm:$0xff]  ;;  %v142_v17 = vld [vmem:[%s1813_s1 + $0x1b0] sm:$0xff] }
  0x10   :  { %v128_v20 = vld [vmem:[%s1813_s1 + $0x140] sm:$0xff]  ;;  %335 = vmatpush.msra.mxu1 %v196_v18  ;;  %420 = vmatpush.msra.mxu3 %v121_v31  ;;  %v93_v63 = vld [vmem:[%s1813_s1 + $0x28] sm:$0xff]  ;;  %v38_v18 = vrot.slane %v1050_v7, 1 }
  0x11   :  { %v256_v21 = vld [vmem:[%s1813_s1 + $0x540] sm:$0xff]  ;;  %295 = vmatpush.msra.mxu0 %v128_v20  ;;  %v89_v8 = vld [vmem:[%s1813_s1 + $0x8] sm:$0xff] }
  0x12   :  { %v192_v22 = vld [vmem:[%s1813_s1 + $0x340] sm:$0xff]  ;;  %377 = vmatpush.msra.mxu2 %v256_v21  ;;  %421 = vmatpush.msra.mxu3 %v117_v35  ;;  %v277_v10 = vld [vmem:[%s1813_s1 + $0x5e8] sm:$0xff]  ;;  %v1092_v21 = vsel %vm61_vm0, %v63_v59, %v65_v13  ;;  %v130_v35 = vld [vmem:[%s1813_s1 + $0x150] sm:$0xff] }
  0x13   :  { %v124_v24 = vld [vmem:[%s1813_s1 + $0x120] sm:$0xff]  ;;  %336 = vmatpush.msra.mxu1 %v192_v22  ;;  %v213_v14 = vld [vmem:[%s1813_s1 + $0x3e8] sm:$0xff]  ;;  %v206_v22 = vld [vmem:[%s1813_s1 + $0x3b0] sm:$0xff] }
  0x14   :  { %v252_v25 = vld [vmem:[%s1813_s1 + $0x520] sm:$0xff]  ;;  %296 = vmatpush.msra.mxu0 %v124_v24  ;;  %422 = vmatpush.msra.mxu3 %v113_v39  ;;  %v273_v15 = vld [vmem:[%s1813_s1 + $0x5c8] sm:$0xff]  ;;  %v1103_v24 = vld [vmem:[%s1814_s0 + $0x18] sm:$0xff] }
  0x15   :  { %v188_v26 = vld [vmem:[%s1813_s1 + $0x320] sm:$0xff]  ;;  %378 = vmatpush.msra.mxu2 %v252_v25  ;;  %v209_v19 = vld [vmem:[%s1813_s1 + $0x3c8] sm:$0xff]  ;;  %v1106_v25 = vsel %vm34_vm1, %v36_v1, %v38_v18  ;;  %v194_v39 = vld [vmem:[%s1813_s1 + $0x350] sm:$0xff] }
  0x16   :  { %v120_v28 = vld [vmem:[%s1813_s1 + $0x100] sm:$0xff]  ;;  %337 = vmatpush.msra.mxu1 %v188_v26  ;;  %423 = vmatpush.msra.mxu3 %v109_v43  ;;  %v269_v20 = vld [vmem:[%s1813_s1 + $0x5a8] sm:$0xff] }
  0x17   :  { %v248_v29 = vld [vmem:[%s1813_s1 + $0x500] sm:$0xff]  ;;  %297 = vmatpush.msra.mxu0 %v120_v28  ;;  %v205_v26 = vld [vmem:[%s1813_s1 + $0x3a8] sm:$0xff]  ;;  %v202_v28 = vld [vmem:[%s1813_s1 + $0x390] sm:$0xff] }
  0x18   :  { %v184_v30 = vld [vmem:[%s1813_s1 + $0x300] sm:$0xff]  ;;  %379 = vmatpush.msra.mxu2 %v248_v29  ;;  %424 = vmatpush.msra.mxu3 %v105_v48  ;;  %v265_v27 = vld [vmem:[%s1813_s1 + $0x588] sm:$0xff]  ;;  %v67_v29 = vrot.slane %v1103_v24, 2 }
  0x19   :  { %v116_v32 = vld [vmem:[%s1813_s1 + $0xe0] sm:$0xff]  ;;  %338 = vmatpush.msra.mxu1 %v184_v30  ;;  %v134_v30 = vld [vmem:[%s1813_s1 + $0x170] sm:$0xff]  ;;  %v201_v31 = vld [vmem:[%s1813_s1 + $0x388] sm:$0xff] }
  0x1a   :  { %v244_v33 = vld [vmem:[%s1813_s1 + $0x4e0] sm:$0xff]  ;;  %298 = vmatpush.msra.mxu0 %v116_v32  ;;  %425 = vmatpush.msra.mxu3 %v101_v53  ;;  %v261_v32 = vld [vmem:[%s1813_s1 + $0x568] sm:$0xff]  ;;  %v186_v53 = vld [vmem:[%s1813_s1 + $0x310] sm:$0xff] }
  0x1b   :  { %v180_v34 = vld [vmem:[%s1813_s1 + $0x2e0] sm:$0xff]  ;;  %380 = vmatpush.msra.mxu2 %v244_v33  ;;  %v40_v33 = vrot.slane %v1103_v24, 1  ;;  %v193_v43 = vld [vmem:[%s1813_s1 + $0x348] sm:$0xff] }
  0x1c   :  { %v112_v36 = vld [vmem:[%s1813_s1 + $0xc0] sm:$0xff]  ;;  %339 = vmatpush.msra.mxu1 %v180_v34  ;;  %426 = vmatpush.msra.mxu3 %v97_v57  ;;  %v198_v34 = vld [vmem:[%s1813_s1 + $0x370] sm:$0xff]  ;;  %v189_v48 = vld [vmem:[%s1813_s1 + $0x328] sm:$0xff] }
  0x1d   :  { %v240_v37 = vld [vmem:[%s1813_s1 + $0x4c0] sm:$0xff]  ;;  %299 = vmatpush.msra.mxu0 %v112_v36  ;;  %v197_v36 = vld [vmem:[%s1813_s1 + $0x368] sm:$0xff] }
  0x1e   :  { %v176_v38 = vld [vmem:[%s1813_s1 + $0x2c0] sm:$0xff]  ;;  %381 = vmatpush.msra.mxu2 %v240_v37  ;;  %427 = vmatpush.msra.mxu3 %v93_v63  ;;  %v257_v37 = vld [vmem:[%s1813_s1 + $0x548] sm:$0xff] }
  0x1f   :  { %v108_v40 = vld [vmem:[%s1813_s1 + $0xa0] sm:$0xff]  ;;  %340 = vmatpush.msra.mxu1 %v176_v38  ;;  %v1145_v38 = vsel %vm61_vm0, %v65_v13, %v67_v29  ;;  %v181_v63 = vld [vmem:[%s1813_s1 + $0x2e8] sm:$0xff]  ;;  %v106_v13 = vld [vmem:[%s1813_s1 + $0x90] sm:$0xff] }
  0x20   :  { %v236_v41 = vld [vmem:[%s1813_s1 + $0x4a0] sm:$0xff]  ;;  %300 = vmatpush.msra.mxu0 %v108_v40  ;;  %428 = vmatpush.msra.mxu3 %v89_v8  ;;  %v237_v8 = vld [vmem:[%s1813_s1 + $0x4a8] sm:$0xff] }
  0x21   :  { %v172_v42 = vld [vmem:[%s1813_s1 + $0x2a0] sm:$0xff]  ;;  %382 = vmatpush.msra.mxu2 %v236_v41  ;;  %v126_v41 = vld [vmem:[%s1813_s1 + $0x130] sm:$0xff] }
  0x22   :  { %v104_v44 = vld [vmem:[%s1813_s1 + $0x80] sm:$0xff]  ;;  %341 = vmatpush.msra.mxu1 %v172_v42  ;;  %577 = vmatpush.msrb.mxu3 %v214_v11  ;;  %v1157_v42 = vsel %vm34_vm1, %v38_v18, %v40_v33  ;;  %v170_v18 = vld [vmem:[%s1813_s1 + $0x290] sm:$0xff] }
  0x23   :  { %v232_v45 = vld [vmem:[%s1813_s1 + $0x480] sm:$0xff]  ;;  %301 = vmatpush.msra.mxu0 %v104_v44  ;;  %v253_v44 = vld [vmem:[%s1813_s1 + $0x528] sm:$0xff] }
  0x24   :  { %v100_v46 = vld [vmem:[%s1813_s1 + $0x60] sm:$0xff]  ;;  %383 = vmatpush.msra.mxu2 %v232_v45  ;;  %578 = vmatpush.msrb.mxu3 %v210_v16 }
  0x25   :  { %v168_v47 = vld [vmem:[%s1813_s1 + $0x280] sm:$0xff]  ;;  %302 = vmatpush.msra.mxu0 %v100_v46  ;;  %v190_v46 = vld [vmem:[%s1813_s1 + $0x330] sm:$0xff] }
  0x26   :  { %v228_v49 = vld [vmem:[%s1813_s1 + $0x460] sm:$0xff]  ;;  %342 = vmatpush.msra.mxu1 %v168_v47  ;;  %579 = vmatpush.msrb.mxu3 %v206_v22  ;;  %v122_v47 = vld [vmem:[%s1813_s1 + $0x110] sm:$0xff]  ;;  %v169_v22 = vld [vmem:[%s1813_s1 + $0x288] sm:$0xff] }
  0x27   :  { %v991_v50 = vld [vmem:[%s1814_s0] sm:$0xff]  ;;  %384 = vmatpush.msra.mxu2 %v228_v49  ;;  %v249_v49 = vld [vmem:[%s1813_s1 + $0x508] sm:$0xff] }
  0x28   :  { %v164_v52 = vld [vmem:[%s1813_s1 + $0x260] sm:$0xff]  ;;  %v62_v58 = vrot.slane %v991_v50, 2  ;;  %v35_v0 = vrot.slane %v991_v50, 1  ;;  %429 = vmatmul.f32.vlgmr.msra.gmra.mxu3 %v991_v50 }
  0x29   :  { %v96_v54 = vld [vmem:[%s1813_s1 + $0x40] sm:$0xff]  ;;  %343 = vmatpush.msra.mxu1 %v164_v52  ;;  %580 = vmatpush.msrb.mxu3 %v202_v28  ;;  %v98_v28 = vld [vmem:[%s1813_s1 + $0x50] sm:$0xff] }
  0x2a   :  { %v224_v55 = vld [vmem:[%s1813_s1 + $0x440] sm:$0xff]  ;;  %303 = vmatpush.msra.mxu0 %v96_v54  ;;  %v1039_v4 = vsel %vm61_vm0, %v62_v58, %v63_v59  ;;  %v1056_v9 = vsel %vm34_vm1, %v35_v0, %v36_v1  ;;  %v118_v54 = vld [vmem:[%s1813_s1 + $0xf0] sm:$0xff]  ;;  %v1199_v58 = vld [vmem:[%s1814_s0 + $0x28] sm:$0xff] }
  0x2b   :  { %v160_v56 = vld [vmem:[%s1813_s1 + $0x240] sm:$0xff]  ;;  %385 = vmatpush.msra.mxu2 %v224_v55  ;;  %581 = vmatpush.msrb.mxu3 %v198_v34  ;;  %v185_v55 = vld [vmem:[%s1813_s1 + $0x308] sm:$0xff]  ;;  %v1204_v59 = vld [vmem:[%s1814_s0 + $0x30] sm:$0xff]  ;;  %v71_v1 = vrot.slane %v1199_v58, 2 }
  0x2c   :  { %v92_v60 = vld [vmem:[%s1813_s1 + $0x20] sm:$0xff]  ;;  %344 = vmatpush.msra.mxu1 %v160_v56  ;;  %v245_v56 = vld [vmem:[%s1813_s1 + $0x4e8] sm:$0xff]  ;;  %v45_v11 = vrot.slane %v1204_v59, 1 }
  0x2d   :  { %v220_v61 = vld [vmem:[%s1813_s1 + $0x420] sm:$0xff]  ;;  %304 = vmatpush.msra.mxu0 %v92_v60  ;;  %582 = vmatpush.msrb.mxu3 %v194_v39  ;;  %v182_v60 = vld [vmem:[%s1813_s1 + $0x2f0] sm:$0xff]  ;;  %v241_v0 = vld [vmem:[%s1813_s1 + $0x4c8] sm:$0xff] }
  0x2e   :  { %v156_v62 = vld [vmem:[%s1813_s1 + $0x220] sm:$0xff]  ;;  %386 = vmatpush.msra.mxu2 %v220_v61  ;;  %v114_v61 = vld [vmem:[%s1813_s1 + $0xd0] sm:$0xff]  ;;  %v161_v34 = vld [vmem:[%s1813_s1 + $0x248] sm:$0xff] }
  0x2f   :  { %v88_v2 = vld [vmem:[%s1813_s1] sm:$0xff]  ;;  %345 = vmatpush.msra.mxu1 %v156_v62  ;;  %583 = vmatpush.msrb.mxu3 %v190_v46  ;;  %v158_v39 = vld [vmem:[%s1813_s1 + $0x230] sm:$0xff] }
  0x30   :  { %v216_v3 = vld [vmem:[%s1813_s1 + $0x400] sm:$0xff]  ;;  %305 = vmatpush.msra.mxu0 %v88_v2  ;;  %432 = vmatmul.f32.gmra.mxu3 %v996_v51  ;;  %v72_v2 = vrot.slane %v1204_v59, 2  ;;  %v154_v46 = vld [vmem:[%s1813_s1 + $0x210] sm:$0xff] }
  0x31   :  { %v152_v6 = vld [vmem:[%s1813_s1 + $0x200] sm:$0xff]  ;;  %387 = vmatpush.msra.mxu2 %v216_v3  ;;  %306 = vmatmul.f32.vlgmr.msra.gmra.mxu0 %v991_v50  ;;  %v178_v3 = vld [vmem:[%s1813_s1 + $0x2d0] sm:$0xff] }
  0x32   :  { %388 = vmatmul.f32.vlgmr.msra.gmra.mxu2 %v1039_v4  ;;  %346 = vmatpush.msra.mxu1 %v152_v6  ;;  %v18_v40 = vld [vmem:[%s1814_s0 + $0x20] sm:$0x3]  ;;  %v177_v6 = vld [vmem:[%s1813_s1 + $0x2c8] sm:$0xff]  ;;  %v1254_v16 = vsel %vm61_vm0, %v71_v1, %v72_v2 }
  0x33   :  { %536 = vmatpush.msrb.mxu2 %v150_v5  ;;  %347 = vmatmul.f32.vlgmr.msra.gmra.mxu1 %v1056_v9  ;;  %v69_v45 = vrot.slane %v18_v40, 2  ;;  %v42_v52 = vrot.slane %v18_v40, 1  ;;  %v110_v5 = vld [vmem:[%s1813_s1 + $0xb0] sm:$0xff] }
  0x34   :  { %495 = vmatpush.msrb.mxu1 %v277_v10  ;;  %454 = vmatpush.msrb.mxu0 %v213_v14  ;;  %v44_v10 = vrot.slane %v1199_v58, 1  ;;  %v173_v14 = vld [vmem:[%s1813_s1 + $0x2a8] sm:$0xff]  ;;  %v90_v40 = vld [vmem:[%s1813_s1 + $0x10] sm:$0xff] }
  0x35   :  { %537 = vmatpush.msrb.mxu2 %v146_v12  ;;  %v1194_v57 = vsel %vm61_vm0, %v67_v29, %v69_v45  ;;  %584 = vmatpush.msrb.mxu3 %v186_v53  ;;  %v1213_v62 = vsel %vm34_vm1, %v40_v33, %v42_v52  ;;  %v174_v12 = vld [vmem:[%s1813_s1 + $0x2b0] sm:$0xff]  ;;  %v165_v29 = vld [vmem:[%s1813_s1 + $0x268] sm:$0xff]  ;;  %v151_v53 = vld [vmem:[%s1813_s1 + $0x1f8] sm:$0xff] }
  0x36   :  { %496 = vmatpush.msrb.mxu1 %v273_v15  ;;  %455 = vmatpush.msrb.mxu0 %v209_v19  ;;  %v233_v15 = vld [vmem:[%s1813_s1 + $0x488] sm:$0xff]  ;;  %v102_v19 = vld [vmem:[%s1813_s1 + $0x70] sm:$0xff] }
  0x37   :  { %538 = vmatpush.msrb.mxu2 %v142_v17  ;;  %585 = vmatpush.msrb.mxu3 %v182_v60  ;;  %v1259_v17 = vld [vmem:[%s1814_s0 + $0x38] sm:$0xff]  ;;  %v94_v33 = vld [vmem:[%s1813_s1 + $0x30] sm:$0xff] }
  0x38   :  { %497 = vmatpush.msrb.mxu1 %v269_v20  ;;  %456 = vmatpush.msrb.mxu0 %v205_v26  ;;  %v1268_v20 = vsel %vm34_vm1, %v44_v10, %v45_v11  ;;  %v74_v26 = vrot.slane %v1259_v17, 2  ;;  %v267_v10 = vld [vmem:[%s1813_s1 + $0x598] sm:$0xff] }
  0x39   :  { %309 = vmatmul.f32.gmra.mxu0 %v996_v51  ;;  %539 = vmatpush.msrb.mxu2 %v138_v23  ;;  %v229_v23 = vld [vmem:[%s1813_s1 + $0x468] sm:$0xff] }
  0x3a   :  { %391 = vmatmul.f32.gmra.mxu2 %v1092_v21  ;;  %498 = vmatpush.msrb.mxu1 %v265_v27  ;;  %v166_v27 = vld [vmem:[%s1813_s1 + $0x270] sm:$0xff] }
  0x3b   :  { %350 = vmatmul.f32.gmra.mxu1 %v1106_v25  ;;  %540 = vmatpush.msrb.mxu2 %v134_v30  ;;  %v225_v30 = vld [vmem:[%s1813_s1 + $0x448] sm:$0xff] }
  0x3c   :  { %457 = vmatpush.msrb.mxu0 %v201_v31  ;;  %499 = vmatpush.msrb.mxu1 %v261_v32  ;;  %v47_v31 = vrot.slane %v1259_v17, 1  ;;  %v162_v32 = vld [vmem:[%s1813_s1 + $0x250] sm:$0xff] }
  0x3d   :  { %541 = vmatpush.msrb.mxu2 %v130_v35  ;;  %435 = vmatmul.f32.gmra.mxu3 %v1050_v7  ;;  %v221_v35 = vld [vmem:[%s1813_s1 + $0x428] sm:$0xff] }
  0x3e   :  { %458 = vmatpush.msrb.mxu0 %v197_v36  ;;  %500 = vmatpush.msrb.mxu1 %v257_v37  ;;  %v1307_v36 = vsel %vm61_vm0, %v72_v2, %v74_v26  ;;  %v1312_v37 = vld [vmem:[%s1814_s0 + $0x40] sm:$0xff]  ;;  %v271_v2 = vld [vmem:[%s1813_s1 + $0x5b8] sm:$0xff] }
  0x3f   :  { %542 = vmatpush.msrb.mxu2 %v126_v41  ;;  %586 = vmatpush.msrb.mxu3 %v178_v3  ;;  %v1321_v41 = vsel %vm34_vm1, %v45_v11, %v47_v31  ;;  %v76_v45 = vrot.slane %v1312_v37, 2  ;;  %v49_v52 = vrot.slane %v1312_v37, 1  ;;  %v274_v3 = vld [vmem:[%s1813_s1 + $0x5d0] sm:$0xff] }
  0x40   :  { %459 = vmatpush.msrb.mxu0 %v193_v43  ;;  %501 = vmatpush.msrb.mxu1 %v253_v44  ;;  %v157_v43 = vld [vmem:[%s1813_s1 + $0x228] sm:$0xff]  ;;  %v270_v11 = vld [vmem:[%s1813_s1 + $0x5b0] sm:$0xff] }
  0x41   :  { %312 = vmatmul.f32.gmra.mxu0 %v1050_v7  ;;  %543 = vmatpush.msrb.mxu2 %v122_v47  ;;  %v217_v44 = vld [vmem:[%s1813_s1 + $0x408] sm:$0xff]  ;;  %v1360_v60 = vsel %vm61_vm0, %v74_v26, %v76_v45  ;;  %v1372_v1 = vsel %vm34_vm1, %v47_v31, %v49_v52  ;;  %v255_v31 = vld [vmem:[%s1813_s1 + $0x538] sm:$0xff] }
  0x42   :  { %394 = vmatmul.f32.gmra.mxu2 %v1145_v38  ;;  %460 = vmatpush.msrb.mxu0 %v189_v48  ;;  %v153_v47 = vld [vmem:[%s1813_s1 + $0x208] sm:$0xff]  ;;  %v215_v48 = vld [vmem:[%s1813_s1 + $0x3f8] sm:$0xff] }
  0x43   :  { %353 = vmatmul.f32.gmra.mxu1 %v1157_v42  ;;  %544 = vmatpush.msrb.mxu2 %v118_v54  ;;  %v278_v54 = vld [vmem:[%s1813_s1 + $0x5f0] sm:$0xff] }
  0x44   :  { %502 = vmatpush.msrb.mxu1 %v249_v49  ;;  %461 = vmatpush.msrb.mxu0 %v185_v55  ;;  %v279_v49 = vld [vmem:[%s1813_s1 + $0x5f8] sm:$0xff] }
  0x45   :  { %545 = vmatpush.msrb.mxu2 %v114_v61  ;;  %438 = vmatmul.f32.gmra.mxu3 %v1103_v24  ;;  %v211_v55 = vld [vmem:[%s1813_s1 + $0x3d8] sm:$0xff]  ;;  %v23_v61 = vld [vmem:[%s1814_s0 + $0x48] sm:$0x3] }
  0x46   :  { %503 = vmatpush.msrb.mxu1 %v245_v56  ;;  %462 = vmatpush.msrb.mxu0 %v181_v63  ;;  %v275_v56 = vld [vmem:[%s1813_s1 + $0x5d8] sm:$0xff] }
  0x47   :  { %546 = vmatpush.msrb.mxu2 %v110_v5  ;;  %587 = vmatpush.msrb.mxu3 %v174_v12  ;;  %v147_v63 = vld [vmem:[%s1813_s1 + $0x1d8] sm:$0xff]  ;;  %v78_v5 = vrot.slane %v23_v61, 2  ;;  %v51_v12 = vrot.slane %v23_v61, 1 }
  0x48   :  { %504 = vmatpush.msrb.mxu1 %v241_v0  ;;  %463 = vmatpush.msrb.mxu0 %v177_v6  ;;  %v207_v0 = vld [vmem:[%s1813_s1 + $0x3b8] sm:$0xff] }
  0x49   :  { %315 = vmatmul.f32.gmra.mxu0 %v1103_v24  ;;  %547 = vmatpush.msrb.mxu2 %v106_v13  ;;  %v143_v6 = vld [vmem:[%s1813_s1 + $0x1b8] sm:$0xff]  ;;  %v1418_v26 = vsel %vm34_vm1, %v49_v52, %v51_v12  ;;  %v230_v12 = vld [vmem:[%s1813_s1 + $0x470] sm:$0xff] }
  0x4a   :  { %397 = vmatmul.f32.gmra.mxu2 %v1194_v57  ;;  %505 = vmatpush.msrb.mxu1 %v237_v8  ;;  %v203_v8 = vld [vmem:[%s1813_s1 + $0x398] sm:$0xff] }
  0x4b   :  { %356 = vmatmul.f32.gmra.mxu1 %v1213_v62  ;;  %464 = vmatpush.msrb.mxu0 %v173_v14  ;;  %v139_v13 = vld [vmem:[%s1813_s1 + $0x198] sm:$0xff] }
  0x4c   :  { %506 = vmatpush.msrb.mxu1 %v233_v15  ;;  %588 = vmatpush.msrb.mxu3 %v170_v18  ;;  %v199_v14 = vld [vmem:[%s1813_s1 + $0x378] sm:$0xff]  ;;  %v266_v18 = vld [vmem:[%s1813_s1 + $0x590] sm:$0xff] }
  0x4d   :  { %548 = vmatpush.msrb.mxu2 %v102_v19  ;;  %465 = vmatpush.msrb.mxu0 %v169_v22  ;;  %v263_v15 = vld [vmem:[%s1813_s1 + $0x578] sm:$0xff]  ;;  %v1409_v19 = vsel %vm61_vm0, %v76_v45, %v78_v5  ;;  %v250_v45 = vld [vmem:[%s1813_s1 + $0x510] sm:$0xff] }
  0x4e   :  { %441 = vmatmul.f32.gmra.mxu3 %v1199_v58  ;;  %507 = vmatpush.msrb.mxu1 %v229_v23  ;;  %v135_v22 = vld [vmem:[%s1813_s1 + $0x178] sm:$0xff] }
  0x4f   :  { %589 = vmatpush.msrb.mxu3 %v166_v27  ;;  %549 = vmatpush.msrb.mxu2 %v98_v28  ;;  %v195_v23 = vld [vmem:[%s1813_s1 + $0x358] sm:$0xff]  ;;  %v262_v28 = vld [vmem:[%s1813_s1 + $0x570] sm:$0xff] }
  0x50   :  { %466 = vmatpush.msrb.mxu0 %v165_v29  ;;  %508 = vmatpush.msrb.mxu1 %v225_v30  ;;  %v259_v27 = vld [vmem:[%s1813_s1 + $0x558] sm:$0xff] }
  0x51   :  { %318 = vmatmul.f32.gmra.mxu0 %v1199_v58  ;;  %590 = vmatpush.msrb.mxu3 %v162_v32  ;;  %v131_v29 = vld [vmem:[%s1813_s1 + $0x158] sm:$0xff]  ;;  %v258_v32 = vld [vmem:[%s1813_s1 + $0x550] sm:$0xff] }
  0x52   :  { %400 = vmatmul.f32.gmra.mxu2 %v1254_v16  ;;  %467 = vmatpush.msrb.mxu0 %v161_v34  ;;  %v191_v30 = vld [vmem:[%s1813_s1 + $0x338] sm:$0xff] }
  0x53   :  { %359 = vmatmul.f32.gmra.mxu1 %v1268_v20  ;;  %550 = vmatpush.msrb.mxu2 %v94_v33  ;;  %v127_v33 = vld [vmem:[%s1813_s1 + $0x138] sm:$0xff] }
  0x54   :  { %509 = vmatpush.msrb.mxu1 %v221_v35  ;;  %591 = vmatpush.msrb.mxu3 %v158_v39  ;;  %v187_v34 = vld [vmem:[%s1813_s1 + $0x318] sm:$0xff]  ;;  %v254_v39 = vld [vmem:[%s1813_s1 + $0x530] sm:$0xff] }
  0x55   :  { %551 = vmatpush.msrb.mxu2 %v90_v40  ;;  %468 = vmatpush.msrb.mxu0 %v157_v43  ;;  %v251_v35 = vld [vmem:[%s1813_s1 + $0x518] sm:$0xff] }
  0x56   :  { %444 = vmatmul.f32.gmra.mxu3 %v1204_v59  ;;  %510 = vmatpush.msrb.mxu1 %v217_v44  ;;  %v123_v40 = vld [vmem:[%s1813_s1 + $0x118] sm:$0xff] }
  0x57   :  { %592 = vmatpush.msrb.mxu3 %v154_v46  ;;  %469 = vmatpush.msrb.mxu0 %v153_v47  ;;  %v183_v43 = vld [vmem:[%s1813_s1 + $0x2f8] sm:$0xff] }
  0x58   :  { %700 = vmatpush.msra.mxu2 %v215_v48  ;;  %659 = vmatpush.msra.mxu1 %v151_v53  ;;  %v247_v44 = vld [vmem:[%s1813_s1 + $0x4f8] sm:$0xff] }
  0x59   :  { %321 = vmatmul.f32.gmra.mxu0 %v1204_v59  ;;  %741 = vmatpush.msra.mxu3 %v279_v49  ;;  %v119_v46 = vld [vmem:[%s1813_s1 + $0xf8] sm:$0xff]  ;;  %v246_v49 = vld [vmem:[%s1813_s1 + $0x4f0] sm:$0xff] }
  0x5a   :  { %403 = vmatmul.f32.gmra.mxu2 %v1307_v36  ;;  %618 = vmatpush.msra.mxu0 %v278_v54  ;;  %v179_v47 = vld [vmem:[%s1813_s1 + $0x2d8] sm:$0xff] }
  0x5b   :  { %362 = vmatmul.f32.gmra.mxu1 %v1321_v41  ;;  %701 = vmatpush.msra.mxu2 %v211_v55  ;;  %v243_v48 = vld [vmem:[%s1813_s1 + $0x4d8] sm:$0xff]  ;;  %v242_v55 = vld [vmem:[%s1813_s1 + $0x4d0] sm:$0xff] }
  0x5c   :  { %742 = vmatpush.msra.mxu3 %v275_v56  ;;  %660 = vmatpush.msra.mxu1 %v147_v63  ;;  %v115_v52 = vld [vmem:[%s1813_s1 + $0xd8] sm:$0xff] }
  0x5d   :  { %702 = vmatpush.msra.mxu2 %v207_v0  ;;  %619 = vmatpush.msra.mxu0 %v274_v3  ;;  %v175_v53 = vld [vmem:[%s1813_s1 + $0x2b8] sm:$0xff]  ;;  %v238_v0 = vld [vmem:[%s1813_s1 + $0x4b0] sm:$0xff] }
  0x5e   :  { %743 = vmatpush.msra.mxu3 %v271_v2  ;;  %661 = vmatpush.msra.mxu1 %v143_v6  ;;  %v239_v54 = vld [vmem:[%s1813_s1 + $0x4b8] sm:$0xff]  ;;  %v234_v6 = vld [vmem:[%s1813_s1 + $0x490] sm:$0xff] }
  0x5f   :  { %447 = vmatmul.f32.gmra.mxu3 %v1259_v17  ;;  %703 = vmatpush.msra.mxu2 %v203_v8  ;;  %v111_v56 = vld [vmem:[%s1813_s1 + $0xb8] sm:$0xff] }
  0x60   :  { %744 = vmatpush.msra.mxu3 %v267_v10  ;;  %620 = vmatpush.msra.mxu0 %v270_v11  ;;  %v171_v61 = vld [vmem:[%s1813_s1 + $0x298] sm:$0xff] }
  0x61   :  { %324 = vmatmul.f32.gmra.mxu0 %v1259_v17  ;;  %662 = vmatpush.msra.mxu1 %v139_v13  ;;  %v235_v63 = vld [vmem:[%s1813_s1 + $0x498] sm:$0xff] }
  0x62   :  { %406 = vmatmul.f32.gmra.mxu2 %v1360_v60  ;;  %745 = vmatpush.msra.mxu3 %v263_v15  ;;  %v107_v2 = vld [vmem:[%s1813_s1 + $0x98] sm:$0xff] }
  0x63   :  { %365 = vmatmul.f32.gmra.mxu1 %v1372_v1  ;;  %704 = vmatpush.msra.mxu2 %v199_v14  ;;  %v167_v3 = vld [vmem:[%s1813_s1 + $0x278] sm:$0xff] }
  0x64   :  { %621 = vmatpush.msra.mxu0 %v266_v18  ;;  %663 = vmatpush.msra.mxu1 %v135_v22  ;;  %v231_v5 = vld [vmem:[%s1813_s1 + $0x478] sm:$0xff]  ;;  %v226_v18 = vld [vmem:[%s1813_s1 + $0x450] sm:$0xff] }
  0x65   :  { %705 = vmatpush.msra.mxu2 %v195_v23  ;;  %746 = vmatpush.msra.mxu3 %v259_v27  ;;  %v103_v8 = vld [vmem:[%s1813_s1 + $0x78] sm:$0xff]  ;;  %v222_v27 = vld [vmem:[%s1813_s1 + $0x430] sm:$0xff] }
  0x66   :  { %622 = vmatpush.msra.mxu0 %v262_v28  ;;  %664 = vmatpush.msra.mxu1 %v131_v29  ;;  %v163_v10 = vld [vmem:[%s1813_s1 + $0x258] sm:$0xff]  ;;  %v218_v29 = vld [vmem:[%s1813_s1 + $0x410] sm:$0xff] }
  0x67   :  { %450 = vmatmul.f32.gmra.mxu3 %v1312_v37  ;;  %706 = vmatpush.msra.mxu2 %v191_v30  ;;  %v227_v11 = vld [vmem:[%s1813_s1 + $0x458] sm:$0xff] }
  0x68   :  { %747 = vmatpush.msra.mxu3 %v255_v31  ;;  %623 = vmatpush.msra.mxu0 %v258_v32  ;;  %v99_v13 = vld [vmem:[%s1813_s1 + $0x58] sm:$0xff]  ;;  %v1587_v31 = vld [vmem:[%s1815_s2] sm:$0xf] }
  0x69   :  { %327 = vmatmul.f32.gmra.mxu0 %v1312_v37  ;;  %665 = vmatpush.msra.mxu1 %v127_v33  ;;  %v159_v14 = vld [vmem:[%s1813_s1 + $0x238] sm:$0xff]  ;;  %v1593_v32 = vperm.slane %v1587_v31, 0 }
  0x6a   :  { %409 = vmatmul.f32.gmra.mxu2 %v1409_v19  ;;  %748 = vmatpush.msra.mxu3 %v251_v35  ;;  %v223_v15 = vld [vmem:[%s1813_s1 + $0x438] sm:$0xff] }
  0x6b   :  { %368 = vmatmul.f32.gmra.mxu1 %v1418_v26  ;;  %707 = vmatpush.msra.mxu2 %v187_v34  ;;  %v95_v22 = vld [vmem:[%s1813_s1 + $0x38] sm:$0xff] }
  0x6c   :  { %624 = vmatpush.msra.mxu0 %v254_v39  ;;  %666 = vmatpush.msra.mxu1 %v123_v40  ;;  %v155_v23 = vld [vmem:[%s1813_s1 + $0x218] sm:$0xff] }
  0x6d   :  { %708 = vmatpush.msra.mxu2 %v183_v43  ;;  %749 = vmatpush.msra.mxu3 %v247_v44  ;;  %v219_v28 = vld [vmem:[%s1813_s1 + $0x418] sm:$0xff] }
  0x6e   :  { %625 = vmatpush.msra.mxu0 %v250_v45  ;;  %667 = vmatpush.msra.mxu1 %v119_v46  ;;  %v91_v30 = vld [vmem:[%s1813_s1 + $0x18] sm:$0xff] }
  0x6f   :  { %593 = vmatmul.f32.vlgmr.msrb.gmra.mxu3 %v1056_v9  ;;  %709 = vmatpush.msra.mxu2 %v179_v47 }
  0x70   :  { %750 = vmatpush.msra.mxu3 %v243_v48  ;;  %626 = vmatpush.msra.mxu0 %v246_v49 }
  0x71   :  { %470 = vmatmul.f32.vlgmr.msrb.gmra.mxu0 %v1056_v9  ;;  %668 = vmatpush.msra.mxu1 %v115_v52 }
  0x72   :  { %552 = vmatmul.f32.vlgmr.msrb.gmra.mxu2 %v991_v50  ;;  %751 = vmatpush.msra.mxu3 %v239_v54 }
  0x73   :  { %511 = vmatmul.f32.vlgmr.msrb.gmra.mxu1 %v1039_v4  ;;  %710 = vmatpush.msra.mxu2 %v175_v53 }
  0x74   :  { %627 = vmatpush.msra.mxu0 %v242_v55  ;;  %669 = vmatpush.msra.mxu1 %v111_v56 }
  0x75   :  { %711 = vmatpush.msra.mxu2 %v171_v61  ;;  %752 = vmatpush.msra.mxu3 %v235_v63 }
  0x76   :  { %628 = vmatpush.msra.mxu0 %v238_v0  ;;  %670 = vmatpush.msra.mxu1 %v107_v2 }
  0x77   :  { %596 = vmatmul.f32.gmra.mxu3 %v1106_v25  ;;  %712 = vmatpush.msra.mxu2 %v167_v3 }
  0x78   :  { %753 = vmatpush.msra.mxu3 %v231_v5  ;;  %629 = vmatpush.msra.mxu0 %v234_v6 }
  0x79   :  { %473 = vmatmul.f32.gmra.mxu0 %v1106_v25  ;;  %671 = vmatpush.msra.mxu1 %v103_v8 }
  0x7a   :  { %555 = vmatmul.f32.gmra.mxu2 %v996_v51  ;;  %754 = vmatpush.msra.mxu3 %v227_v11 }
  0x7b   :  { %514 = vmatmul.f32.gmra.mxu1 %v1092_v21  ;;  %713 = vmatpush.msra.mxu2 %v163_v10 }
  0x7c   :  { %630 = vmatpush.msra.mxu0 %v230_v12  ;;  %672 = vmatpush.msra.mxu1 %v99_v13 }
  0x7d   :  { %714 = vmatpush.msra.mxu2 %v159_v14  ;;  %755 = vmatpush.msra.mxu3 %v223_v15 }
  0x7e   :  { %631 = vmatpush.msra.mxu0 %v226_v18  ;;  %673 = vmatpush.msra.mxu1 %v95_v22 }
  0x7f   :  { %599 = vmatmul.f32.gmra.mxu3 %v1157_v42  ;;  %715 = vmatpush.msra.mxu2 %v155_v23 }
  0x80   :  { %632 = vmatpush.msra.mxu0 %v222_v27  ;;  %756 = vmatpush.msra.mxu3 %v219_v28  ;;  %v1666_v27 = vperm.slane %v1587_v31, 1 }
  0x81   :  { %476 = vmatmul.f32.gmra.mxu0 %v1157_v42  ;;  %674 = vmatpush.msra.mxu1 %v91_v30 }
  0x82   :  { %558 = vmatmul.f32.gmra.mxu2 %v1050_v7  ;;  %633 = vmatpush.msra.mxu0 %v218_v29 }
  0x83   :  { %517 = vmatmul.f32.gmra.mxu1 %v1145_v38 }
  0x87   :  { %602 = vmatmul.f32.gmra.mxu3 %v1213_v62 }
  0x89   :  { %479 = vmatmul.f32.gmra.mxu0 %v1213_v62 }
  0x8a   :  { %561 = vmatmul.f32.gmra.mxu2 %v1103_v24 }
  0x8b   :  { %520 = vmatmul.f32.gmra.mxu1 %v1194_v57 }
  0x8f   :  { %605 = vmatmul.f32.gmra.mxu3 %v1268_v20 }
  0x91   :  { %482 = vmatmul.f32.gmra.mxu0 %v1268_v20 }
  0x92   :  { %564 = vmatmul.f32.gmra.mxu2 %v1199_v58 }
  0x93   :  { %523 = vmatmul.f32.gmra.mxu1 %v1254_v16 }
  0x97   :  { %608 = vmatmul.f32.gmra.mxu3 %v1321_v41 }
  0x99   :  { %485 = vmatmul.f32.gmra.mxu0 %v1321_v41 }
  0x9a   :  { %567 = vmatmul.f32.gmra.mxu2 %v1204_v59 }
  0x9b   :  { %526 = vmatmul.f32.gmra.mxu1 %v1307_v36 }
  0x9f   :  { %611 = vmatmul.f32.gmra.mxu3 %v1372_v1 }
  0xa1   :  { %488 = vmatmul.f32.gmra.mxu0 %v1372_v1 }
  0xa2   :  { %570 = vmatmul.f32.gmra.mxu2 %v1259_v17 }
  0xa3   :  { %529 = vmatmul.f32.gmra.mxu1 %v1360_v60 }
  0xa7   :  { %614 = vmatmul.f32.gmra.mxu3 %v1418_v26 }
  0xa9   :  { %491 = vmatmul.f32.gmra.mxu0 %v1418_v26 }
  0xaa   :  { %573 = vmatmul.f32.gmra.mxu2 %v1312_v37 }
  0xab   :  { %532 = vmatmul.f32.gmra.mxu1 %v1409_v19  ;;  %v1605_v46 = vpop.f32.mrf.mxu3 }
  0xae   :  { %v307_v33 = vpop.f32.mrf.mxu0 }
  0xaf   :  { %v308_v34 = vadd.f32 %v307_v33, %v1593_v32  ;;  %757 = vmatmul.f32.vlgmr.msra.gmra.mxu3 %v1039_v4 }
  0xb0   :  { %v348_v35 = vpop.f32.mrf.mxu1 }
  0xb1   :  { %v349_v39 = vadd.f32 %v348_v35, %v308_v34  ;;  %634 = vmatmul.f32.vlgmr.msra.gmra.mxu0 %v1039_v4 }
  0xb2   :  { %716 = vmatmul.f32.vlgmr.msra.gmra.mxu2 %v1056_v9 }
  0xb3   :  { %675 = vmatmul.f32.vlgmr.msra.gmra.mxu1 %v991_v50  ;;  %v1615_v52 = vpop.f32.mrf.mxu3 }
  0xb5   :  { %v389_v40 = vpop.f32.mrf.mxu2 }
  0xb6   :  { %v390_v43 = vadd.f32 %v389_v40, %v349_v39  ;;  %v310_v44 = vpop.f32.mrf.mxu0 }
  0xb7   :  { %v311_v45 = vadd.f32 %v310_v44, %v1593_v32  ;;  %760 = vmatmul.f32.gmra.mxu3 %v1092_v21 }
  0xb8   :  { %782 = vst [vmem:[%s1816_s3] sm:$0xff] %v390_v43  ;;  %v351_v47 = vpop.f32.mrf.mxu1 }
  0xb9   :  { %v352_v48 = vadd.f32 %v351_v47, %v311_v45  ;;  %637 = vmatmul.f32.gmra.mxu0 %v1092_v21 }
  0xba   :  { %719 = vmatmul.f32.gmra.mxu2 %v1106_v25 }
  0xbb   :  { %678 = vmatmul.f32.gmra.mxu1 %v996_v51 }
  0xbd   :  { %v392_v50 = vpop.f32.mrf.mxu2 }
  0xbe   :  { %v393_v4 = vadd.f32 %v392_v50, %v352_v48  ;;  %v313_v9 = vpop.f32.mrf.mxu0 }
  0xbf   :  { %v314_v49 = vadd.f32 %v313_v9, %v1593_v32  ;;  %763 = vmatmul.f32.gmra.mxu3 %v1145_v38 }
  0xc0   :  { %786 = vst [vmem:[%s1816_s3 + $0x20] sm:$0xff] %v393_v4  ;;  %v354_v53 = vpop.f32.mrf.mxu1  ;;  %v1625_v56 = vpop.f32.mrf.mxu3 }
  0xc1   :  { %v355_v54 = vadd.f32 %v354_v53, %v314_v49  ;;  %640 = vmatmul.f32.gmra.mxu0 %v1145_v38  ;;  %v437_v45 = vadd.f32 %v1625_v56, %v1666_v27 }
  0xc2   :  { %722 = vmatmul.f32.gmra.mxu2 %v1157_v42 }
  0xc3   :  { %681 = vmatmul.f32.gmra.mxu1 %v1050_v7 }
  0xc5   :  { %v395_v51 = vpop.f32.mrf.mxu2 }
  0xc6   :  { %v396_v21 = vadd.f32 %v395_v51, %v355_v54  ;;  %v316_v25 = vpop.f32.mrf.mxu0 }
  0xc7   :  { %v317_v55 = vadd.f32 %v316_v25, %v1593_v32  ;;  %766 = vmatmul.f32.gmra.mxu3 %v1194_v57 }
  0xc8   :  { %790 = vst [vmem:[%s1816_s3 + $0x40] sm:$0xff] %v396_v21  ;;  %v357_v61 = vpop.f32.mrf.mxu1  ;;  %v1635_v2 = vpop.f32.mrf.mxu3 }
  0xc9   :  { %v358_v63 = vadd.f32 %v357_v61, %v317_v55  ;;  %643 = vmatmul.f32.gmra.mxu0 %v1194_v57  ;;  %v440_v49 = vadd.f32 %v1635_v2, %v1666_v27 }
  0xca   :  { %725 = vmatmul.f32.gmra.mxu2 %v1213_v62 }
  0xcb   :  { %684 = vmatmul.f32.gmra.mxu1 %v1103_v24 }
  0xcd   :  { %v398_v7 = vpop.f32.mrf.mxu2 }
  0xce   :  { %v399_v38 = vadd.f32 %v398_v7, %v358_v63  ;;  %v319_v42 = vpop.f32.mrf.mxu0 }
  0xcf   :  { %v320_v0 = vadd.f32 %v319_v42, %v1593_v32  ;;  %769 = vmatmul.f32.gmra.mxu3 %v1254_v16 }
  0xd0   :  { %794 = vst [vmem:[%s1816_s3 + $0x60] sm:$0xff] %v399_v38  ;;  %v360_v3 = vpop.f32.mrf.mxu1 }
  0xd1   :  { %v361_v5 = vadd.f32 %v360_v3, %v320_v0  ;;  %646 = vmatmul.f32.gmra.mxu0 %v1254_v16  ;;  %v1645_v8 = vpop.f32.mrf.mxu3 }
  0xd2   :  { %728 = vmatmul.f32.gmra.mxu2 %v1268_v20  ;;  %v443_v55 = vadd.f32 %v1645_v8, %v1666_v27 }
  0xd3   :  { %687 = vmatmul.f32.gmra.mxu1 %v1199_v58 }
  0xd5   :  { %v401_v24 = vpop.f32.mrf.mxu2 }
  0xd6   :  { %v402_v57 = vadd.f32 %v401_v24, %v361_v5  ;;  %v322_v62 = vpop.f32.mrf.mxu0 }
  0xd7   :  { %v323_v6 = vadd.f32 %v322_v62, %v1593_v32  ;;  %772 = vmatmul.f32.gmra.mxu3 %v1307_v36 }
  0xd8   :  { %798 = vst [vmem:[%s1816_s3 + $0x80] sm:$0xff] %v402_v57  ;;  %v363_v10 = vpop.f32.mrf.mxu1 }
  0xd9   :  { %v364_v11 = vadd.f32 %v363_v10, %v323_v6  ;;  %649 = vmatmul.f32.gmra.mxu0 %v1307_v36  ;;  %v1655_v13 = vpop.f32.mrf.mxu3 }
  0xda   :  { %731 = vmatmul.f32.gmra.mxu2 %v1321_v41  ;;  %v446_v0 = vadd.f32 %v1655_v13, %v1666_v27  ;;  %v1725_v13 = vperm.slane %v1587_v31, 2 }
  0xdb   :  { %690 = vmatmul.f32.gmra.mxu1 %v1204_v59 }
  0xdd   :  { %v404_v58 = vpop.f32.mrf.mxu2 }
  0xde   :  { %v405_v16 = vadd.f32 %v404_v58, %v364_v11  ;;  %v325_v20 = vpop.f32.mrf.mxu0 }
  0xdf   :  { %v326_v12 = vadd.f32 %v325_v20, %v1593_v32  ;;  %775 = vmatmul.f32.gmra.mxu3 %v1360_v60 }
  0xe0   :  { %802 = vst [vmem:[%s1816_s3 + $0xa0] sm:$0xff] %v405_v16  ;;  %v366_v14 = vpop.f32.mrf.mxu1 }
  0xe1   :  { %v367_v15 = vadd.f32 %v366_v14, %v326_v12  ;;  %652 = vmatmul.f32.gmra.mxu0 %v1360_v60  ;;  %v431_v60 = vadd.f32 %v1605_v46, %v1666_v27 }
  0xe2   :  { %734 = vmatmul.f32.gmra.mxu2 %v1372_v1  ;;  %v448_v22 = vpop.f32.mrf.mxu3 }
  0xe3   :  { %693 = vmatmul.f32.gmra.mxu1 %v1259_v17  ;;  %v449_v6 = vadd.f32 %v448_v22, %v1666_v27 }
  0xe5   :  { %v407_v59 = vpop.f32.mrf.mxu2 }
  0xe6   :  { %v408_v36 = vadd.f32 %v407_v59, %v367_v15  ;;  %v328_v41 = vpop.f32.mrf.mxu0 }
  0xe7   :  { %v329_v18 = vadd.f32 %v328_v41, %v1593_v32  ;;  %778 = vmatmul.f32.gmra.mxu3 %v1409_v19 }
  0xe8   :  { %806 = vst [vmem:[%s1816_s3 + $0xc0] sm:$0xff] %v408_v36  ;;  %v369_v23 = vpop.f32.mrf.mxu1 }
  0xe9   :  { %v370_v28 = vadd.f32 %v369_v23, %v329_v18  ;;  %655 = vmatmul.f32.gmra.mxu0 %v1409_v19  ;;  %v434_v19 = vadd.f32 %v1615_v52, %v1666_v27 }
  0xea   :  { %737 = vmatmul.f32.gmra.mxu2 %v1418_v26  ;;  %v451_v30 = vpop.f32.mrf.mxu3 }
  0xeb   :  { %696 = vmatmul.f32.gmra.mxu1 %v1312_v37  ;;  %v452_v12 = vadd.f32 %v451_v30, %v1666_v27  ;;  %v1736_v27 = vperm.slane %v1587_v31, 3 }
  0xed   :  { %v410_v17 = vpop.f32.mrf.mxu2 }
  0xee   :  { %v411_v1 = vadd.f32 %v410_v17, %v370_v28  ;;  %v471_v29 = vpop.f32.mrf.mxu0 }
  0xef   :  { %v472_v32 = vadd.f32 %v471_v29, %v431_v60 }
  0xf0   :  { %810 = vst [vmem:[%s1816_s3 + $0xe0] sm:$0xff] %v411_v1  ;;  %v512_v33 = vpop.f32.mrf.mxu1 }
  0xf1   :  { %v513_v34 = vadd.f32 %v512_v33, %v472_v32 }
  0xf2   :  { %v594_v39 = vpop.f32.mrf.mxu3 }
  0xf3   :  { %783 = vst [vmem:[%s1816_s3 + $0x8] sm:$0xff] %v513_v34 }
  0xf5   :  { %v553_v37 = vpop.f32.mrf.mxu2 }
  0xf6   :  { %v474_v26 = vpop.f32.mrf.mxu0  ;;  %v554_v41 = vadd.f32 %v553_v37, %v1725_v13 }
  0xf7   :  { %v475_v35 = vadd.f32 %v474_v26, %v434_v19 }
  0xf8   :  { %v515_v40 = vpop.f32.mrf.mxu1  ;;  %v595_v23 = vadd.f32 %v594_v39, %v554_v41 }
  0xf9   :  { %v516_v43 = vadd.f32 %v515_v40, %v475_v35 }
  0xfa   :  { %v597_v48 = vpop.f32.mrf.mxu3 }
  0xfb   :  { %787 = vst [vmem:[%s1816_s3 + $0x28] sm:$0xff] %v516_v43 }
  0xfd   :  { %v556_v44 = vpop.f32.mrf.mxu2 }
  0xfe   :  { %v477_v46 = vpop.f32.mrf.mxu0  ;;  %v557_v29 = vadd.f32 %v556_v44, %v1725_v13 }
  0xff   :  { %v478_v47 = vadd.f32 %v477_v46, %v437_v45 }
 0x100   :  { %v518_v50 = vpop.f32.mrf.mxu1  ;;  %v598_v33 = vadd.f32 %v597_v48, %v557_v29 }
 0x101   :  { %v519_v4 = vadd.f32 %v518_v50, %v478_v47 }
 0x102   :  { %v600_v54 = vpop.f32.mrf.mxu3 }
 0x103   :  { %791 = vst [vmem:[%s1816_s3 + $0x48] sm:$0xff] %v519_v4 }
 0x105   :  { %v559_v9 = vpop.f32.mrf.mxu2 }
 0x106   :  { %v480_v52 = vpop.f32.mrf.mxu0  ;;  %v560_v39 = vadd.f32 %v559_v9, %v1725_v13 }
 0x107   :  { %v481_v53 = vadd.f32 %v480_v52, %v440_v49 }
 0x108   :  { %v521_v51 = vpop.f32.mrf.mxu1  ;;  %v601_v44 = vadd.f32 %v600_v54, %v560_v39 }
 0x109   :  { %v522_v21 = vadd.f32 %v521_v51, %v481_v53 }
 0x10a   :  { %v1699_v63 = vpop.f32.mrf.mxu3 }
 0x10b   :  { %795 = vst [vmem:[%s1816_s3 + $0x68] sm:$0xff] %v522_v21 }
 0x10d   :  { %v1695_v25 = vpop.f32.mrf.mxu2 }
 0x10e   :  { %v483_v56 = vpop.f32.mrf.mxu0  ;;  %v563_v9 = vadd.f32 %v1695_v25, %v1725_v13 }
 0x10f   :  { %v484_v61 = vadd.f32 %v483_v56, %v443_v55 }
 0x110   :  { %v524_v7 = vpop.f32.mrf.mxu1  ;;  %v604_v53 = vadd.f32 %v1699_v63, %v563_v9 }
 0x111   :  { %v525_v38 = vadd.f32 %v524_v7, %v484_v61 }
 0x112   :  { %v1708_v5 = vpop.f32.mrf.mxu3 }
 0x113   :  { %799 = vst [vmem:[%s1816_s3 + $0x88] sm:$0xff] %v525_v38 }
 0x115   :  { %v1704_v42 = vpop.f32.mrf.mxu2 }
 0x116   :  { %v486_v2 = vpop.f32.mrf.mxu0  ;;  %v566_v25 = vadd.f32 %v1704_v42, %v1725_v13 }
 0x117   :  { %v487_v3 = vadd.f32 %v486_v2, %v446_v0 }
 0x118   :  { %v527_v24 = vpop.f32.mrf.mxu1  ;;  %v607_v38 = vadd.f32 %v1708_v5, %v566_v25 }
 0x119   :  { %v528_v57 = vadd.f32 %v527_v24, %v487_v3 }
 0x11a   :  { %v1716_v11 = vpop.f32.mrf.mxu3 }
 0x11b   :  { %803 = vst [vmem:[%s1816_s3 + $0xa8] sm:$0xff] %v528_v57 }
 0x11d   :  { %v1713_v62 = vpop.f32.mrf.mxu2 }
 0x11e   :  { %v489_v8 = vpop.f32.mrf.mxu0  ;;  %v569_v42 = vadd.f32 %v1713_v62, %v1725_v13 }
 0x11f   :  { %v490_v10 = vadd.f32 %v489_v8, %v449_v6 }
 0x120   :  { %v530_v58 = vpop.f32.mrf.mxu1 }
 0x121   :  { %v531_v16 = vadd.f32 %v530_v58, %v490_v10  ;;  %v610_v10 = vadd.f32 %v1716_v11, %v569_v42 }
 0x122   :  { %v1727_v59 = vpop.f32.mrf.mxu3 }
 0x123   :  { %807 = vst [vmem:[%s1816_s3 + $0xc8] sm:$0xff] %v531_v16 }
 0x125   :  { %v1721_v20 = vpop.f32.mrf.mxu2 }
 0x126   :  { %v492_v14 = vpop.f32.mrf.mxu0  ;;  %v572_v62 = vadd.f32 %v1721_v20, %v1725_v13 }
 0x127   :  { %v493_v15 = vadd.f32 %v492_v14, %v452_v12 }
 0x128   :  { %v533_v36 = vpop.f32.mrf.mxu1 }
 0x129   :  { %v534_v18 = vadd.f32 %v533_v36, %v493_v15 }
 0x12a   :  { %v1738_v17 = vpop.f32.mrf.mxu3 }
 0x12b   :  { %811 = vst [vmem:[%s1816_s3 + $0xe8] sm:$0xff] %v534_v18  ;;  %v613_v18 = vadd.f32 %v1727_v59, %v572_v62 }
 0x12d   :  { %v1733_v22 = vpop.f32.mrf.mxu2 }
 0x12e   :  { %v635_v28 = vpop.f32.mrf.mxu0  ;;  %v575_v20 = vadd.f32 %v1733_v22, %v1725_v13 }
 0x12f   :  { %v636_v60 = vadd.f32 %v635_v28, %v595_v23 }
 0x130   :  { %v676_v1 = vpop.f32.mrf.mxu1 }
 0x131   :  { %784 = vst [vmem:[%s1816_s3 + $0x10] sm:$0xff] %v636_v60  ;;  %v677_v30 = vadd.f32 %v676_v1, %v1736_v27 }
 0x132   :  { %v758_v31 = vpop.f32.mrf.mxu3 }
 0x135   :  { %v717_v32 = vpop.f32.mrf.mxu2 }
 0x136   :  { %v718_v34 = vadd.f32 %v717_v32, %v677_v30  ;;  %v638_v37 = vpop.f32.mrf.mxu0 }
 0x137   :  { %v639_v19 = vadd.f32 %v638_v37, %v598_v33  ;;  %v616_v33 = vadd.f32 %v1738_v17, %v575_v20 }
 0x138   :  { %v759_v26 = vadd.f32 %v758_v31, %v718_v34  ;;  %v679_v35 = vpop.f32.mrf.mxu1 }
 0x139   :  { %788 = vst [vmem:[%s1816_s3 + $0x30] sm:$0xff] %v639_v19  ;;  %v680_v40 = vadd.f32 %v679_v35, %v1736_v27 }
 0x13a   :  { %785 = vst [vmem:[%s1816_s3 + $0x18] sm:$0xff] %v759_v26  ;;  %v761_v48 = vpop.f32.mrf.mxu3 }
 0x13d   :  { %v720_v43 = vpop.f32.mrf.mxu2 }
 0x13e   :  { %v721_v45 = vadd.f32 %v720_v43, %v680_v40  ;;  %v641_v46 = vpop.f32.mrf.mxu0 }
 0x13f   :  { %v642_v47 = vadd.f32 %v641_v46, %v601_v44 }
 0x140   :  { %v762_v50 = vadd.f32 %v761_v48, %v721_v45  ;;  %v682_v4 = vpop.f32.mrf.mxu1 }
 0x141   :  { %792 = vst [vmem:[%s1816_s3 + $0x50] sm:$0xff] %v642_v47  ;;  %v683_v49 = vadd.f32 %v682_v4, %v1736_v27 }
 0x142   :  { %789 = vst [vmem:[%s1816_s3 + $0x38] sm:$0xff] %v762_v50  ;;  %v764_v55 = vpop.f32.mrf.mxu3 }
 0x145   :  { %v723_v52 = vpop.f32.mrf.mxu2 }
 0x146   :  { %v724_v54 = vadd.f32 %v723_v52, %v683_v49  ;;  %v644_v51 = vpop.f32.mrf.mxu0 }
 0x147   :  { %v645_v21 = vadd.f32 %v644_v51, %v604_v53 }
 0x148   :  { %v765_v56 = vadd.f32 %v764_v55, %v724_v54  ;;  %v685_v61 = vpop.f32.mrf.mxu1 }
 0x149   :  { %796 = vst [vmem:[%s1816_s3 + $0x70] sm:$0xff] %v645_v21  ;;  %v686_v7 = vadd.f32 %v685_v61, %v1736_v27 }
 0x14a   :  { %793 = vst [vmem:[%s1816_s3 + $0x58] sm:$0xff] %v765_v56  ;;  %v767_v24 = vpop.f32.mrf.mxu3 }
 0x14d   :  { %v726_v63 = vpop.f32.mrf.mxu2 }
 0x14e   :  { %v727_v0 = vadd.f32 %v726_v63, %v686_v7  ;;  %v647_v2 = vpop.f32.mrf.mxu0 }
 0x14f   :  { %v648_v3 = vadd.f32 %v647_v2, %v607_v38 }
 0x150   :  { %v768_v57 = vadd.f32 %v767_v24, %v727_v0  ;;  %v688_v6 = vpop.f32.mrf.mxu1 }
 0x151   :  { %800 = vst [vmem:[%s1816_s3 + $0x90] sm:$0xff] %v648_v3  ;;  %v689_v8 = vadd.f32 %v688_v6, %v1736_v27 }
 0x152   :  { %797 = vst [vmem:[%s1816_s3 + $0x78] sm:$0xff] %v768_v57  ;;  %v770_v14 = vpop.f32.mrf.mxu3 }
 0x155   :  { %v729_v5 = vpop.f32.mrf.mxu2 }
 0x156   :  { %v730_v58 = vadd.f32 %v729_v5, %v689_v8  ;;  %v650_v16 = vpop.f32.mrf.mxu0 }
 0x157   :  { %v651_v12 = vadd.f32 %v650_v16, %v610_v10 }
 0x158   :  { %v771_v15 = vadd.f32 %v770_v14, %v730_v58  ;;  %v691_v36 = vpop.f32.mrf.mxu1 }
 0x159   :  { %804 = vst [vmem:[%s1816_s3 + $0xb0] sm:$0xff] %v651_v12  ;;  %v692_v41 = vadd.f32 %v691_v36, %v1736_v27 }
 0x15a   :  { %801 = vst [vmem:[%s1816_s3 + $0x98] sm:$0xff] %v771_v15  ;;  %v773_v1 = vpop.f32.mrf.mxu3 }
 0x15d   :  { %v732_v11 = vpop.f32.mrf.mxu2 }
 0x15e   :  { %v733_v23 = vadd.f32 %v732_v11, %v692_v41  ;;  %v653_v28 = vpop.f32.mrf.mxu0 }
 0x15f   :  { %v654_v60 = vadd.f32 %v653_v28, %v613_v18 }
 0x160   :  { %v774_v29 = vadd.f32 %v773_v1, %v733_v23  ;;  %v694_v30 = vpop.f32.mrf.mxu1 }
 0x161   :  { %808 = vst [vmem:[%s1816_s3 + $0xd0] sm:$0xff] %v654_v60  ;;  %v695_v32 = vadd.f32 %v694_v30, %v1736_v27 }
 0x162   :  { %805 = vst [vmem:[%s1816_s3 + $0xb8] sm:$0xff] %v774_v29  ;;  %v776_v31 = vpop.f32.mrf.mxu3 }
 0x165   :  { %v735_v59 = vpop.f32.mrf.mxu2 }
 0x166   :  { %v736_v34 = vadd.f32 %v735_v59, %v695_v32  ;;  %v656_v37 = vpop.f32.mrf.mxu0 }
 0x167   :  { %v657_v19 = vadd.f32 %v656_v37, %v616_v33 }
 0x168   :  { %v777_v26 = vadd.f32 %v776_v31, %v736_v34  ;;  %v697_v35 = vpop.f32.mrf.mxu1 }
 0x169   :  { %812 = vst [vmem:[%s1816_s3 + $0xf0] sm:$0xff] %v657_v19  ;;  %v698_v13 = vadd.f32 %v697_v35, %v1736_v27 }
 0x16a   :  { %809 = vst [vmem:[%s1816_s3 + $0xd8] sm:$0xff] %v777_v26  ;;  %v779_v40 = vpop.f32.mrf.mxu3 }
 0x16d   :  { %v738_v22 = vpop.f32.mrf.mxu2 }
 0x16e   :  { %v739_v39 = vadd.f32 %v738_v22, %v698_v13 }
 0x170   :  { %v780_v17 = vadd.f32 %v779_v40, %v739_v39 }
 0x172   :  { %813 = vst [vmem:[%s1816_s3 + $0xf8] sm:$0xff] %v780_v17 }

</bundles_post_ra>
